<compile_context>
chip_gen: v5e
topology: v5e:2x2
jax: 0.10.0
libtpu: 0.0.40
codegen_flags: <defaults>
</compile_context>

<pallas_src>
from functools import partial
import math

import jax
import jax.numpy as jnp
from jax import lax
from jax.experimental import pallas as pl
from jax.experimental.pallas import tpu as pltpu

_EPS = 1e-12                 # torch.nn.functional.normalize eps
_F32 = jnp.float32

_VMEM_LIMIT_CACHE = [None]


def _vmem_limit_bytes():
    # ~96 MiB on v5e/v6e (128 MiB physical), ~48 MiB on v7x (64 MiB physical).
    if _VMEM_LIMIT_CACHE[0] is None:
        try:
            cap = int(pltpu.get_tpu_info().vmem_capacity_bytes)
        except Exception:
            cap = 64 * 1024 * 1024
        _VMEM_LIMIT_CACHE[0] = max(32 * 1024 * 1024,
                                   min((cap * 3) // 4, 100 * 1024 * 1024))
    return _VMEM_LIMIT_CACHE[0]


def _cparams(dims):
    return pltpu.CompilerParams(dimension_semantics=dims,
                                vmem_limit_bytes=_vmem_limit_bytes())


def _l2n_heads(x, sct):
    """Per-head L2 normalization of head-major channels.

    x: (rows, H*d) f32; sct: (H, H*d) 0/1 head indicator.
    == torch F.normalize(x_per_head, dim=-1) done for all heads at once.
    """
    ssq = lax.dot_general(x * x, sct, (((1,), (1,)), ((), ())),
                          preferred_element_type=_F32)                 # (rows, H)
    inv = lax.rsqrt(jnp.maximum(ssq, _EPS * _EPS))                     # 1/max(||x||, eps)
    return x * jnp.dot(inv, sct, preferred_element_type=_F32)          # (rows, H*d)


# ----------------------------------------------------------------------------
# Direct attention (N <= N0): fully fused qkv -> attention -> proj, one call.
# ----------------------------------------------------------------------------
def _direct_fused_kernel(xq_ref, xkv_ref, wq_ref, bq_ref, wk_ref, bk_ref, wv_ref, bv_ref,
                         tc_ref, sct_ref, wp_ref, bp_ref, o_ref, attn_ref,
                         *, H, d, a, b, c):
    sct = sct_ref[...]
    # fused qkv projection: q for this row tile only, k/v for the (batch-resident) sequence
    q = jnp.dot(xq_ref[...], wq_ref[...], preferred_element_type=_F32) + bq_ref[...]
    k = jnp.dot(xkv_ref[...], wk_ref[...], preferred_element_type=_F32) + bk_ref[...]
    v = jnp.dot(xkv_ref[...], wv_ref[...], preferred_element_type=_F32) + bv_ref[...]
    qn = _l2n_heads(q, sct) * tc_ref[...]          # normalize(q) * temperature   (tq, H*d)
    kn = _l2n_heads(k, sct)                        # normalize(k)                 (N,  H*d)
    for h in range(H):                             # per-head scores; N <= N0 so these stay tiny
        sl = slice(h * d, (h + 1) * d)
        s = lax.dot_general(qn[:, sl], kn[:, sl], (((1,), (1,)), ((), ())),
                            preferred_element_type=_F32)               # (tq, N)
        # reference's max_val pre-scaling cancels exactly under the row-sum below
        p = (a * s) * s + b * s + c
        p = p / jnp.sum(p, axis=-1, keepdims=True)                     # exact (parity)
        attn_ref[:, sl] = jnp.dot(p, v[:, sl], preferred_element_type=_F32)
    y = jnp.dot(attn_ref[...], wp_ref[...], preferred_element_type=_F32) + bp_ref[...]
    o_ref[...] = y.astype(o_ref.dtype)


def _direct_attention_fused(x, params, temp_c, s_ct, *, H, d, a, b, c, q_tile):
    B, N, Cin = x.shape
    Ca = H * d
    Cout = params["w_proj"].shape[1]
    tq = N if N <= q_tile else q_tile
    res = lambda r, cdim: pl.BlockSpec((r, cdim), lambda bi, qi: (0, 0))
    return pl.pallas_call(
        partial(_direct_fused_kernel, H=H, d=d, a=a, b=b, c=c),
        out_shape=jax.ShapeDtypeStruct((B, N, Cout), x.dtype),
        grid=(B, pl.cdiv(N, tq)),
        in_specs=[
            pl.BlockSpec((None, tq, Cin), lambda bi, qi: (bi, qi, 0)),   # x (q rows)
            pl.BlockSpec((None, N, Cin), lambda bi, qi: (bi, 0, 0)),     # x (k/v rows, resident)
            res(Cin, Ca), res(1, Ca),        # w_q, b_q
            res(Cin, Ca), res(1, Ca),        # w_k, b_k
            res(Cin, Ca), res(1, Ca),        # w_v, b_v
            res(1, Ca),                      # temperature per channel
            res(H, Ca),                      # head indicator
            res(Ca, Cout), res(1, Cout),     # w_proj, b_proj
        ],
        out_specs=pl.BlockSpec((None, tq, Cout), lambda bi, qi: (bi, qi, 0)),
        scratch_shapes=[pltpu.VMEM((tq, Ca), _F32)],
        compiler_params=_cparams(("parallel", "parallel")),
    )(x, x, params["w_q"], params["b_q"], params["w_k"], params["b_k"],
      params["w_v"], params["b_v"], temp_c, s_ct,
      params["w_proj"], params["b_proj"])


# ----------------------------------------------------------------------------
# Efficient ("TaylorShift") attention (N > N0): two fused, row-tiled calls.
#   phase 1: k/v projection + per-head k/v moments, accumulated over N tiles
#   phase 2: q projection + linear attention + output projection
# ----------------------------------------------------------------------------
def _eff_stats_kernel(x_ref, wk_ref, bk_ref, wv_ref, bv_ref, sct_ref, ei_ref, ej_ref,
                      mkv_ref, mktv_ref,
                      kv_ref, ktv_ref, vsum_ref, kkm_ref, km_ref,
                      *, N, tn, scale):
    t = pl.program_id(1)

    @pl.when(t == 0)
    def _init():
        kv_ref[...] = jnp.zeros_like(kv_ref)
        ktv_ref[...] = jnp.zeros_like(ktv_ref)
        vsum_ref[...] = jnp.zeros_like(vsum_ref)
        kkm_ref[...] = jnp.zeros_like(kkm_ref)
        km_ref[...] = jnp.zeros_like(km_ref)

    x = x_ref[...]
    k = jnp.dot(x, wk_ref[...], preferred_element_type=_F32) + bk_ref[...]
    v = jnp.dot(x, wv_ref[...], preferred_element_type=_F32) + bv_ref[...]
    if N % tn:                       # zero padded rows of the last (partial) tile
        rows = t * tn + lax.broadcasted_iota(jnp.int32, (tn, 1), 0)
        k = jnp.where(rows < N, k, 0.0)
        v = jnp.where(rows < N, v, 0.0)

    inv_n = 1.0 / N
    kn = _l2n_heads(k, sct_ref[...]) * scale                            # normalize(k)*scale
    vn = v * inv_n                                                      # v / N
    # box(k, k) for all heads at once -> (tn, H*d*d), lane-dense
    kk = (jnp.dot(kn, ei_ref[...], preferred_element_type=_F32)
          * jnp.dot(kn, ej_ref[...], preferred_element_type=_F32))

    tn_dims = (((0,), (0,)), ((), ()))                                  # contract over rows
    kv_ref[...] += lax.dot_general(kk, vn, tn_dims, preferred_element_type=_F32)
    ktv_ref[...] += lax.dot_general(kn, vn, tn_dims, preferred_element_type=_F32)
    vsum_ref[...] += jnp.sum(vn, axis=0, keepdims=True)
    kkm_ref[...] += jnp.sum(kk, axis=0, keepdims=True) * inv_n
    km_ref[...] += jnp.sum(kn, axis=0, keepdims=True) * inv_n

    @pl.when(t == pl.num_programs(1) - 1)
    def _finalize():                 # zero cross-head blocks so phase 2 uses plain matmuls
        kv_ref[...] *= mkv_ref[...]
        ktv_ref[...] *= mktv_ref[...]


def _eff_out_kernel(x_ref, wq_ref, bq_ref, tc_ref, sct_ref, sqqt_ref, ei_ref, ej_ref,
                    kv_ref, ktv_ref, vsum_ref, kkm_ref, km_ref, wp_ref, bp_ref,
                    o_ref, *, a, b, c, scale):
    sct = sct_ref[...]
    q = jnp.dot(x_ref[...], wq_ref[...], preferred_element_type=_F32) + bq_ref[...]
    qn = _l2n_heads(q, sct) * (scale * tc_ref[...])                     # (tq, H*d)
    qq = (jnp.dot(qn, ei_ref[...], preferred_element_type=_F32)
          * jnp.dot(qn, ej_ref[...], preferred_element_type=_F32))      # (tq, H*d*d)

    s2b = (scale * scale) * b
    s4c = (scale ** 4) * c
    num = (a * jnp.dot(qq, kv_ref[...], preferred_element_type=_F32)
           + s2b * jnp.dot(qn, ktv_ref[...], preferred_element_type=_F32)
           + s4c * vsum_ref[...])                                        # (tq, H*d)
    nt = (((1,), (1,)), ((), ()))
    den = (a * lax.dot_general(qq * kkm_ref[...], sqqt_ref[...], nt,
                               preferred_element_type=_F32)
           + s2b * lax.dot_general(qn * km_ref[...], sct, nt,
                                   preferred_element_type=_F32)
           + s4c)                                                        # (tq, H)
    inv = jnp.dot(1.0 / den, sct, preferred_element_type=_F32)          # per-head 1/norm -> chans
    y = jnp.dot(num * inv, wp_ref[...], preferred_element_type=_F32) + bp_ref[...]
    o_ref[...] = y.astype(o_ref.dtype)


def _efficient_attention_fused(x, params, consts, temp_c, *, H, d, a, b, c, scale,
                               n_tile, q_tile):
    B, N, Cin = x.shape
    Ca = H * d
    Hd2 = H * d * d
    Cout = params["w_proj"].shape[1]

    # ---- phase 1: row-tiled reduction of k/v moments (accumulated in resident outputs)
    tn = N if N <= n_tile else n_tile
    res1 = lambda r, cdim: pl.BlockSpec((r, cdim), lambda bi, ti: (0, 0))
    stat1 = lambda r, cdim: pl.BlockSpec((None, r, cdim), lambda bi, ti: (bi, 0, 0))
    kv, ktv, vsum, kkm, km = pl.pallas_call(
        partial(_eff_stats_kernel, N=N, tn=tn, scale=scale),
        out_shape=(jax.ShapeDtypeStruct((B, Hd2, Ca), _F32),
                   jax.ShapeDtypeStruct((B, Ca, Ca), _F32),
                   jax.ShapeDtypeStruct((B, 1, Ca), _F32),
                   jax.ShapeDtypeStruct((B, 1, Hd2), _F32),
                   jax.ShapeDtypeStruct((B, 1, Ca), _F32)),
        grid=(B, pl.cdiv(N, tn)),
        in_specs=[
            pl.BlockSpec((None, tn, Cin), lambda bi, ti: (bi, ti, 0)),
            res1(Cin, Ca), res1(1, Ca),          # w_k, b_k
            res1(Cin, Ca), res1(1, Ca),          # w_v, b_v
            res1(H, Ca),                         # head indicator
            res1(Ca, Hd2), res1(Ca, Hd2),        # box selection matrices
            res1(Hd2, Ca), res1(Ca, Ca),         # block-diagonal masks
        ],
        out_specs=(stat1(Hd2, Ca), stat1(Ca, Ca), stat1(1, Ca),
                   stat1(1, Hd2), stat1(1, Ca)),
        compiler_params=_cparams(("parallel", "arbitrary")),
    )(x, params["w_k"], params["b_k"], params["w_v"], params["b_v"],
      consts["s_ct"], consts["e_i"], consts["e_j"],
      consts["mask_kv"], consts["mask_ktv"])

    # ---- phase 2: q projection + linear attention + output projection
    tq = N if N <= q_tile else q_tile
    res2 = lambda r, cdim: pl.BlockSpec((r, cdim), lambda bi, qi: (0, 0))
    stat2 = lambda r, cdim: pl.BlockSpec((None, r, cdim), lambda bi, qi: (bi, 0, 0))
    return pl.pallas_call(
        partial(_eff_out_kernel, a=a, b=b, c=c, scale=scale),
        out_shape=jax.ShapeDtypeStruct((B, N, Cout), x.dtype),
        grid=(B, pl.cdiv(N, tq)),
        in_specs=[
            pl.BlockSpec((None, tq, Cin), lambda bi, qi: (bi, qi, 0)),
            res2(Cin, Ca), res2(1, Ca),          # w_q, b_q
            res2(1, Ca),                         # temperature per channel
            res2(H, Ca), res2(H, Hd2),           # head indicators
            res2(Ca, Hd2), res2(Ca, Hd2),        # box selection matrices
            stat2(Hd2, Ca), stat2(Ca, Ca), stat2(1, Ca), stat2(1, Hd2), stat2(1, Ca),
            res2(Ca, Cout), res2(1, Cout),       # w_proj, b_proj
        ],
        out_specs=pl.BlockSpec((None, tq, Cout), lambda bi, qi: (bi, qi, 0)),
        compiler_params=_cparams(("parallel", "parallel")),
    )(x, params["w_q"], params["b_q"], temp_c,
      consts["s_ct"], consts["s_qqt"], consts["e_i"], consts["e_j"],
      kv, ktv, vsum, kkm, km, params["w_proj"], params["b_proj"])


# ----------------------------------------------------------------------------
# Module wrapper (parameter setup + head-bookkeeping constants in plain JAX)
# ----------------------------------------------------------------------------
class TaylorShiftAttentionPallas:
    def __init__(self, dim, num_heads=8, head_dim=None, a=0.5, b=1.0, c=1.0, key=None,
                 eff_row_tile=4096, direct_q_tile=1024):
        self.dim = dim
        self.num_heads = H = num_heads
        self.head_dim = d = int(dim / num_heads) if head_dim is None else head_dim
        assert a > 0 and c >= b ** 2 / (4 * a)
        self.a, self.b, self.c = a, b, c
        self.scale = d ** 0.25                      # normalize_input=True
        self.N0 = int(d ** 2 + d + 1)
        self.eff_row_tile = eff_row_tile
        self.direct_q_tile = direct_q_tile

        Ca = H * d
        k1, k2, k3, k4 = jax.random.split(key, 4)
        # Deterministic synthetic init (not a checkpoint).  torch's qkv channels follow
        # reshape(B,N,3,H,d): channel = which*H*d + h*d + j  ->  w_q/w_k/w_v columns are
        # already head-major (h*d + j), exactly the in-kernel channel layout.
        w_qkv = jax.random.normal(k1, (dim, 3 * Ca), _F32) / math.sqrt(dim)
        b_qkv = jax.random.normal(k2, (3 * Ca,), _F32) * 0.02
        self.params = {
            "w_q": w_qkv[:, 0 * Ca:1 * Ca], "b_q": b_qkv[0 * Ca:1 * Ca].reshape(1, Ca),
            "w_k": w_qkv[:, 1 * Ca:2 * Ca], "b_k": b_qkv[1 * Ca:2 * Ca].reshape(1, Ca),
            "w_v": w_qkv[:, 2 * Ca:3 * Ca], "b_v": b_qkv[2 * Ca:3 * Ca].reshape(1, Ca),
            "w_proj": jax.random.normal(k3, (Ca, dim), _F32) / math.sqrt(Ca),
            "b_proj": (jax.random.normal(k4, (dim,), _F32) * 0.02).reshape(1, dim),
        }
        self.temperature = jnp.ones((1, H), _F32)        # torch: ones(1, H, 1, 1)

        # Static head-bookkeeping constants (tiny, kept VMEM-resident by BlockSpec).
        cid = jnp.arange(Ca)
        hid = jnp.arange(H)
        p = jnp.arange(H * d * d)
        ph, pi, pj = p // (d * d), (p % (d * d)) // d, p % d
        self.consts = {
            # s_ct[h, c]   = [channel c belongs to head h]
            "s_ct": (cid[None, :] // d == hid[:, None]).astype(_F32),            # (H, Ca)
            # s_qqt[h, p]  = [box feature p belongs to head h]
            "s_qqt": (ph[None, :] == hid[:, None]).astype(_F32),                 # (H, Hd2)
            # e_i/e_j select channels h*d+i / h*d+j of box feature p = h*d*d + i*d + j
            "e_i": (cid[:, None] == (ph * d + pi)[None, :]).astype(_F32),        # (Ca, Hd2)
            "e_j": (cid[:, None] == (ph * d + pj)[None, :]).astype(_F32),        # (Ca, Hd2)
            # block-diagonal (same-head) masks for the k/v moment matrices
            "mask_kv": (ph[:, None] == cid[None, :] // d).astype(_F32),          # (Hd2, Ca)
            "mask_ktv": (cid[:, None] // d == cid[None, :] // d).astype(_F32),   # (Ca, Ca)
        }

    def __call__(self, x):
        B, N, Cin = x.shape
        H, d = self.num_heads, self.head_dim
        temp_c = jnp.repeat(self.temperature, d, axis=1)     # per-channel temperature (1, H*d)
        # NOTE: reference's `q * C**-0.5` is inert under L2 normalization -> omitted.
        if N > self.N0:
            return _efficient_attention_fused(
                x, self.params, self.consts, temp_c, H=H, d=d,
                a=self.a, b=self.b, c=self.c, scale=self.scale,
                n_tile=self.eff_row_tile, q_tile=self.eff_row_tile)
        return _direct_attention_fused(
            x, self.params, temp_c, self.consts["s_ct"], H=H, d=d,
            a=self.a, b=self.b, c=self.c, q_tile=self.direct_q_tile)


if __name__ == "__main__":
    root = jax.random.PRNGKey(0)
    kp, kx1, kx2 = jax.random.split(root, 3)

    B, C, H = 2, 32, 8                            # head_dim d = 4  ->  N0 = 21
    mod = TaylorShiftAttentionPallas(dim=C, num_heads=H, key=kp)
    # Same weights, tiny row tiles: exercises the multi-tile N-reduction and partial tiles.
    mod_tiled = TaylorShiftAttentionPallas(dim=C, num_heads=H, key=kp,
                                           eff_row_tile=16, direct_q_tile=8)

    x_eff = jax.random.normal(kx1, (B, 40, C), _F32)   # N > N0  -> efficient (linear) path
    x_dir = jax.random.normal(kx2, (B, 20, C), _F32)   # N <= N0 -> direct path

    y_eff = jax.block_until_ready(mod(x_eff))
    y_dir = jax.block_until_ready(mod(x_dir))
    y_eff_t = jax.block_until_ready(mod_tiled(x_eff))
    y_dir_t = jax.block_until_ready(mod_tiled(x_dir))

    assert y_eff.shape == (B, 40, C) and y_dir.shape == (B, 20, C)
    for y in (y_eff, y_dir, y_eff_t, y_dir_t):
        assert bool(jnp.all(jnp.isfinite(y)))
    # Tiled and untiled grids must agree (same math, different pipelining).
    assert bool(jnp.allclose(y_eff, y_eff_t, rtol=1e-3, atol=1e-3))
    assert bool(jnp.allclose(y_dir, y_dir_t, rtol=1e-3, atol=1e-3))
    print("KERNEL_OK")
</pallas_src>

<mosaic_0001>
module attributes {stable_mosaic.version = 11 : i64} {
  func.func @_eff_stats_kernel(%arg0: i32, %arg1: i32, %arg2: memref<1x40x32xf32, #tpu.memory_space<vmem>>, %arg3: memref<32x32xf32, #tpu.memory_space<vmem>>, %arg4: memref<1x32xf32, #tpu.memory_space<vmem>>, %arg5: memref<32x32xf32, #tpu.memory_space<vmem>>, %arg6: memref<1x32xf32, #tpu.memory_space<vmem>>, %arg7: memref<8x32xf32, #tpu.memory_space<vmem>>, %arg8: memref<32x128xf32, #tpu.memory_space<vmem>>, %arg9: memref<32x128xf32, #tpu.memory_space<vmem>>, %arg10: memref<128x32xf32, #tpu.memory_space<vmem>>, %arg11: memref<32x32xf32, #tpu.memory_space<vmem>>, %arg12: memref<1x128x32xf32, #tpu.memory_space<vmem>>, %arg13: memref<1x32x32xf32, #tpu.memory_space<vmem>>, %arg14: memref<1x1x32xf32, #tpu.memory_space<vmem>>, %arg15: memref<1x1x128xf32, #tpu.memory_space<vmem>>, %arg16: memref<1x1x32xf32, #tpu.memory_space<vmem>>) attributes {dimension_semantics = [#tpu.dimension_semantics<parallel>, #tpu.dimension_semantics<arbitrary>], iteration_bounds = array<i64: 2, 1>, scalar_prefetch = 0 : i64, scratch_operands = 0 : i64, tpu.core_type = #tpu.core_type<tc>, window_params = [{transform_indices = @transform_0, window_bounds = array<i64: 1, 40, 32>}, {pipeline_mode = #tpu.pipeline_mode<synchronous>, transform_indices = @transform_1, window_bounds = array<i64: 32, 32>}, {pipeline_mode = #tpu.pipeline_mode<synchronous>, transform_indices = @transform_2, window_bounds = array<i64: 1, 32>}, {pipeline_mode = #tpu.pipeline_mode<synchronous>, transform_indices = @transform_3, window_bounds = array<i64: 32, 32>}, {pipeline_mode = #tpu.pipeline_mode<synchronous>, transform_indices = @transform_4, window_bounds = array<i64: 1, 32>}, {pipeline_mode = #tpu.pipeline_mode<synchronous>, transform_indices = @transform_5, window_bounds = array<i64: 8, 32>}, {pipeline_mode = #tpu.pipeline_mode<synchronous>, transform_indices = @transform_6, window_bounds = array<i64: 32, 128>}, {pipeline_mode = #tpu.pipeline_mode<synchronous>, transform_indices = @transform_7, window_bounds = array<i64: 32, 128>}, {pipeline_mode = #tpu.pipeline_mode<synchronous>, transform_indices = @transform_8, window_bounds = array<i64: 128, 32>}, {pipeline_mode = #tpu.pipeline_mode<synchronous>, transform_indices = @transform_9, window_bounds = array<i64: 32, 32>}, {transform_indices = @transform_10, window_bounds = array<i64: 1, 128, 32>}, {transform_indices = @transform_11, window_bounds = array<i64: 1, 32, 32>}, {transform_indices = @transform_12, window_bounds = array<i64: 1, 1, 32>}, {transform_indices = @transform_13, window_bounds = array<i64: 1, 1, 128>}, {transform_indices = @transform_14, window_bounds = array<i64: 1, 1, 32>}]} {
    %c0_i32 = arith.constant 0 : i32
    %0 = arith.cmpi eq, %arg1, %c0_i32 : i32
    %1 = arith.extui %0 : i1 to i32
    %c0_i32_0 = arith.constant 0 : i32
    %2 = arith.cmpi ne, %1, %c0_i32_0 : i32
    scf.if %2 {
      %cst_64 = arith.constant 0.000000e+00 : f32
      %77 = vector.broadcast %cst_64 : f32 to vector<128x32xf32>
      %c0_65 = arith.constant 0 : index
      %c0_66 = arith.constant 0 : index
      %c0_67 = arith.constant 0 : index
      %78 = vector.load %arg12[%c0_65, %c0_66, %c0_67] : memref<1x128x32xf32, #tpu.memory_space<vmem>>, vector<1x128x32xf32>
      %79 = vector.shape_cast %78 : vector<1x128x32xf32> to vector<128x32xf32>
      %80 = vector.shape_cast %77 : vector<128x32xf32> to vector<1x128x32xf32>
      tpu.vector_store %arg12[%c0_65, %c0_66, %c0_67], %80 {strides = array<i32>} : memref<1x128x32xf32, #tpu.memory_space<vmem>>, vector<1x128x32xf32>,
      %cst_68 = arith.constant 0.000000e+00 : f32
      %81 = vector.broadcast %cst_68 : f32 to vector<32x32xf32>
      %c0_69 = arith.constant 0 : index
      %c0_70 = arith.constant 0 : index
      %c0_71 = arith.constant 0 : index
      %82 = vector.load %arg13[%c0_69, %c0_70, %c0_71] : memref<1x32x32xf32, #tpu.memory_space<vmem>>, vector<1x32x32xf32>
      %83 = vector.shape_cast %82 : vector<1x32x32xf32> to vector<32x32xf32>
      %84 = vector.shape_cast %81 : vector<32x32xf32> to vector<1x32x32xf32>
      tpu.vector_store %arg13[%c0_69, %c0_70, %c0_71], %84 {strides = array<i32>} : memref<1x32x32xf32, #tpu.memory_space<vmem>>, vector<1x32x32xf32>,
      %cst_72 = arith.constant 0.000000e+00 : f32
      %85 = vector.broadcast %cst_72 : f32 to vector<1x32xf32>
      %c0_73 = arith.constant 0 : index
      %c0_74 = arith.constant 0 : index
      %c0_75 = arith.constant 0 : index
      %86 = vector.load %arg14[%c0_73, %c0_74, %c0_75] : memref<1x1x32xf32, #tpu.memory_space<vmem>>, vector<1x1x32xf32>
      %87 = vector.shape_cast %86 : vector<1x1x32xf32> to vector<1x32xf32>
      %88 = vector.shape_cast %85 : vector<1x32xf32> to vector<1x1x32xf32>
      tpu.vector_store %arg14[%c0_73, %c0_74, %c0_75], %88 {strides = array<i32>} : memref<1x1x32xf32, #tpu.memory_space<vmem>>, vector<1x1x32xf32>,
      %cst_76 = arith.constant 0.000000e+00 : f32
      %89 = vector.broadcast %cst_76 : f32 to vector<1x128xf32>
      %c0_77 = arith.constant 0 : index
      %c0_78 = arith.constant 0 : index
      %c0_79 = arith.constant 0 : index
      %90 = vector.load %arg15[%c0_77, %c0_78, %c0_79] : memref<1x1x128xf32, #tpu.memory_space<vmem>>, vector<1x1x128xf32>
      %91 = vector.shape_cast %90 : vector<1x1x128xf32> to vector<1x128xf32>
      %92 = vector.shape_cast %89 : vector<1x128xf32> to vector<1x1x128xf32>
      tpu.vector_store %arg15[%c0_77, %c0_78, %c0_79], %92 {strides = array<i32>} : memref<1x1x128xf32, #tpu.memory_space<vmem>>, vector<1x1x128xf32>,
      %cst_80 = arith.constant 0.000000e+00 : f32
      %93 = vector.broadcast %cst_80 : f32 to vector<1x32xf32>
      %c0_81 = arith.constant 0 : index
      %c0_82 = arith.constant 0 : index
      %c0_83 = arith.constant 0 : index
      %94 = vector.load %arg16[%c0_81, %c0_82, %c0_83] : memref<1x1x32xf32, #tpu.memory_space<vmem>>, vector<1x1x32xf32>
      %95 = vector.shape_cast %94 : vector<1x1x32xf32> to vector<1x32xf32>
      %96 = vector.shape_cast %93 : vector<1x32xf32> to vector<1x1x32xf32>
      tpu.vector_store %arg16[%c0_81, %c0_82, %c0_83], %96 {strides = array<i32>} : memref<1x1x32xf32, #tpu.memory_space<vmem>>, vector<1x1x32xf32>,
    } else {
    }
    %c0 = arith.constant 0 : index
    %c0_1 = arith.constant 0 : index
    %c0_2 = arith.constant 0 : index
    %3 = vector.load %arg2[%c0, %c0_1, %c0_2] : memref<1x40x32xf32, #tpu.memory_space<vmem>>, vector<1x40x32xf32>
    %4 = vector.shape_cast %3 : vector<1x40x32xf32> to vector<40x32xf32>
    %c0_3 = arith.constant 0 : index
    %c0_4 = arith.constant 0 : index
    %5 = vector.load %arg3[%c0_3, %c0_4] : memref<32x32xf32, #tpu.memory_space<vmem>>, vector<32x32xf32>
    %cst = arith.constant dense<0.000000e+00> : vector<40x32xf32>
    %6 = tpu.matmul %4, %5, %cst {dimension_numbers = #tpu.dot_dimension_numbers<[1], [0], [0], [1], [0, 0, 1, 1], [], []>} : vector<40x32xf32>, vector<32x32xf32>, vector<40x32xf32> -> vector<40x32xf32>
    %c0_5 = arith.constant 0 : index
    %c0_6 = arith.constant 0 : index
    %7 = vector.load %arg4[%c0_5, %c0_6] : memref<1x32xf32, #tpu.memory_space<vmem>>, vector<1x32xf32>
    %8 = vector.broadcast %7 : vector<1x32xf32> to vector<40x32xf32>
    %9 = arith.addf %6, %8 : vector<40x32xf32>
    %c0_7 = arith.constant 0 : index
    %c0_8 = arith.constant 0 : index
    %10 = vector.load %arg5[%c0_7, %c0_8] : memref<32x32xf32, #tpu.memory_space<vmem>>, vector<32x32xf32>
    %cst_9 = arith.constant dense<0.000000e+00> : vector<40x32xf32>
    %11 = tpu.matmul %4, %10, %cst_9 {dimension_numbers = #tpu.dot_dimension_numbers<[1], [0], [0], [1], [0, 0, 1, 1], [], []>} : vector<40x32xf32>, vector<32x32xf32>, vector<40x32xf32> -> vector<40x32xf32>
    %c0_10 = arith.constant 0 : index
    %c0_11 = arith.constant 0 : index
    %12 = vector.load %arg6[%c0_10, %c0_11] : memref<1x32xf32, #tpu.memory_space<vmem>>, vector<1x32xf32>
    %13 = vector.broadcast %12 : vector<1x32xf32> to vector<40x32xf32>
    %14 = arith.addf %11, %13 : vector<40x32xf32>
    %c0_12 = arith.constant 0 : index
    %c0_13 = arith.constant 0 : index
    %15 = vector.load %arg7[%c0_12, %c0_13] : memref<8x32xf32, #tpu.memory_space<vmem>>, vector<8x32xf32>
    %16 = arith.mulf %9, %9 : vector<40x32xf32>
    %cst_14 = arith.constant dense<0.000000e+00> : vector<40x8xf32>
    %17 = tpu.matmul %16, %15, %cst_14 {dimension_numbers = #tpu.dot_dimension_numbers<[1], [1], [0], [0], [0, 0, 1, 0], [], []>} : vector<40x32xf32>, vector<8x32xf32>, vector<40x8xf32> -> vector<40x8xf32>
    %cst_15 = arith.constant 1.000000e-24 : f32
    %18 = vector.broadcast %cst_15 : f32 to vector<40x8xf32>
    %19 = arith.maximumf %17, %18 : vector<40x8xf32>
    %20 = math.rsqrt %19 : vector<40x8xf32>
    %cst_16 = arith.constant dense<0.000000e+00> : vector<40x32xf32>
    %21 = tpu.matmul %20, %15, %cst_16 {dimension_numbers = #tpu.dot_dimension_numbers<[1], [0], [0], [1], [0, 0, 1, 1], [], []>} : vector<40x8xf32>, vector<8x32xf32>, vector<40x32xf32> -> vector<40x32xf32>
    %22 = arith.mulf %9, %21 : vector<40x32xf32>
    %cst_17 = arith.constant 1.41421354 : f32
    %23 = vector.broadcast %cst_17 : f32 to vector<40x32xf32>
    %24 = arith.mulf %22, %23 : vector<40x32xf32>
    %cst_18 = arith.constant 2.500000e-02 : f32
    %25 = vector.broadcast %cst_18 : f32 to vector<40x32xf32>
    %26 = arith.mulf %14, %25 : vector<40x32xf32>
    %c0_19 = arith.constant 0 : index
    %c0_20 = arith.constant 0 : index
    %27 = vector.load %arg8[%c0_19, %c0_20] : memref<32x128xf32, #tpu.memory_space<vmem>>, vector<32x128xf32>
    %cst_21 = arith.constant dense<0.000000e+00> : vector<40x128xf32>
    %28 = tpu.matmul %24, %27, %cst_21 {dimension_numbers = #tpu.dot_dimension_numbers<[1], [0], [0], [1], [0, 0, 1, 1], [], []>} : vector<40x32xf32>, vector<32x128xf32>, vector<40x128xf32> -> vector<40x128xf32>
    %c0_22 = arith.constant 0 : index
    %c0_23 = arith.constant 0 : index
    %29 = vector.load %arg9[%c0_22, %c0_23] : memref<32x128xf32, #tpu.memory_space<vmem>>, vector<32x128xf32>
    %cst_24 = arith.constant dense<0.000000e+00> : vector<40x128xf32>
    %30 = tpu.matmul %24, %29, %cst_24 {dimension_numbers = #tpu.dot_dimension_numbers<[1], [0], [0], [1], [0, 0, 1, 1], [], []>} : vector<40x32xf32>, vector<32x128xf32>, vector<40x128xf32> -> vector<40x128xf32>
    %31 = arith.mulf %28, %30 : vector<40x128xf32>
    %c0_25 = arith.constant 0 : index
    %c0_26 = arith.constant 0 : index
    %c0_27 = arith.constant 0 : index
    %32 = vector.load %arg12[%c0_25, %c0_26, %c0_27] : memref<1x128x32xf32, #tpu.memory_space<vmem>>, vector<1x128x32xf32>
    %33 = vector.shape_cast %32 : vector<1x128x32xf32> to vector<128x32xf32>
    %cst_28 = arith.constant dense<0.000000e+00> : vector<128x32xf32>
    %34 = tpu.matmul %31, %26, %cst_28 {dimension_numbers = #tpu.dot_dimension_numbers<[0], [0], [1], [1], [0, 1, 1, 1], [], []>} : vector<40x128xf32>, vector<40x32xf32>, vector<128x32xf32> -> vector<128x32xf32>
    %35 = arith.addf %33, %34 : vector<128x32xf32>
    %c0_29 = arith.constant 0 : index
    %c0_30 = arith.constant 0 : index
    %c0_31 = arith.constant 0 : index
    %36 = vector.load %arg12[%c0_29, %c0_30, %c0_31] : memref<1x128x32xf32, #tpu.memory_space<vmem>>, vector<1x128x32xf32>
    %37 = vector.shape_cast %36 : vector<1x128x32xf32> to vector<128x32xf32>
    %38 = vector.shape_cast %35 : vector<128x32xf32> to vector<1x128x32xf32>
    tpu.vector_store %arg12[%c0_29, %c0_30, %c0_31], %38 {strides = array<i32>} : memref<1x128x32xf32, #tpu.memory_space<vmem>>, vector<1x128x32xf32>,
    %c0_32 = arith.constant 0 : index
    %c0_33 = arith.constant 0 : index
    %c0_34 = arith.constant 0 : index
    %39 = vector.load %arg13[%c0_32, %c0_33, %c0_34] : memref<1x32x32xf32, #tpu.memory_space<vmem>>, vector<1x32x32xf32>
    %40 = vector.shape_cast %39 : vector<1x32x32xf32> to vector<32x32xf32>
    %cst_35 = arith.constant dense<0.000000e+00> : vector<32x32xf32>
    %41 = tpu.matmul %24, %26, %cst_35 {dimension_numbers = #tpu.dot_dimension_numbers<[0], [0], [1], [1], [0, 1, 1, 1], [], []>} : vector<40x32xf32>, vector<40x32xf32>, vector<32x32xf32> -> vector<32x32xf32>
    %42 = arith.addf %40, %41 : vector<32x32xf32>
    %c0_36 = arith.constant 0 : index
    %c0_37 = arith.constant 0 : index
    %c0_38 = arith.constant 0 : index
    %43 = vector.load %arg13[%c0_36, %c0_37, %c0_38] : memref<1x32x32xf32, #tpu.memory_space<vmem>>, vector<1x32x32xf32>
    %44 = vector.shape_cast %43 : vector<1x32x32xf32> to vector<32x32xf32>
    %45 = vector.shape_cast %42 : vector<32x32xf32> to vector<1x32x32xf32>
    tpu.vector_store %arg13[%c0_36, %c0_37, %c0_38], %45 {strides = array<i32>} : memref<1x32x32xf32, #tpu.memory_space<vmem>>, vector<1x32x32xf32>,
    %c0_39 = arith.constant 0 : index
    %c0_40 = arith.constant 0 : index
    %c0_41 = arith.constant 0 : index
    %46 = vector.load %arg14[%c0_39, %c0_40, %c0_41] : memref<1x1x32xf32, #tpu.memory_space<vmem>>, vector<1x1x32xf32>
    %47 = vector.shape_cast %46 : vector<1x1x32xf32> to vector<1x32xf32>
    %cst_42 = arith.constant dense<0.000000e+00> : vector<32xf32>
    %48 = vector.multi_reduction <add>, %26, %cst_42 [0] : vector<40x32xf32> to vector<32xf32>
    %49 = vector.shape_cast %48 : vector<32xf32> to vector<1x32xf32>
    %50 = arith.addf %47, %49 : vector<1x32xf32>
    %c0_43 = arith.constant 0 : index
    %c0_44 = arith.constant 0 : index
    %c0_45 = arith.constant 0 : index
    %51 = vector.load %arg14[%c0_43, %c0_44, %c0_45] : memref<1x1x32xf32, #tpu.memory_space<vmem>>, vector<1x1x32xf32>
    %52 = vector.shape_cast %51 : vector<1x1x32xf32> to vector<1x32xf32>
    %53 = vector.shape_cast %50 : vector<1x32xf32> to vector<1x1x32xf32>
    tpu.vector_store %arg14[%c0_43, %c0_44, %c0_45], %53 {strides = array<i32>} : memref<1x1x32xf32, #tpu.memory_space<vmem>>, vector<1x1x32xf32>,
    %c0_46 = arith.constant 0 : index
    %c0_47 = arith.constant 0 : index
    %c0_48 = arith.constant 0 : index
    %54 = vector.load %arg15[%c0_46, %c0_47, %c0_48] : memref<1x1x128xf32, #tpu.memory_space<vmem>>, vector<1x1x128xf32>
    %55 = vector.shape_cast %54 : vector<1x1x128xf32> to vector<1x128xf32>
    %cst_49 = arith.constant dense<0.000000e+00> : vector<128xf32>
    %56 = vector.multi_reduction <add>, %31, %cst_49 [0] : vector<40x128xf32> to vector<128xf32>
    %57 = vector.shape_cast %56 : vector<128xf32> to vector<1x128xf32>
    %cst_50 = arith.constant 2.500000e-02 : f32
    %58 = vector.broadcast %cst_50 : f32 to vector<1x128xf32>
    %59 = arith.mulf %57, %58 : vector<1x128xf32>
    %60 = arith.addf %55, %59 : vector<1x128xf32>
    %c0_51 = arith.constant 0 : index
    %c0_52 = arith.constant 0 : index
    %c0_53 = arith.constant 0 : index
    %61 = vector.load %arg15[%c0_51, %c0_52, %c0_53] : memref<1x1x128xf32, #tpu.memory_space<vmem>>, vector<1x1x128xf32>
    %62 = vector.shape_cast %61 : vector<1x1x128xf32> to vector<1x128xf32>
    %63 = vector.shape_cast %60 : vector<1x128xf32> to vector<1x1x128xf32>
    tpu.vector_store %arg15[%c0_51, %c0_52, %c0_53], %63 {strides = array<i32>} : memref<1x1x128xf32, #tpu.memory_space<vmem>>, vector<1x1x128xf32>,
    %c0_54 = arith.constant 0 : index
    %c0_55 = arith.constant 0 : index
    %c0_56 = arith.constant 0 : index
    %64 = vector.load %arg16[%c0_54, %c0_55, %c0_56] : memref<1x1x32xf32, #tpu.memory_space<vmem>>, vector<1x1x32xf32>
    %65 = vector.shape_cast %64 : vector<1x1x32xf32> to vector<1x32xf32>
    %cst_57 = arith.constant dense<0.000000e+00> : vector<32xf32>
    %66 = vector.multi_reduction <add>, %24, %cst_57 [0] : vector<40x32xf32> to vector<32xf32>
    %67 = vector.shape_cast %66 : vector<32xf32> to vector<1x32xf32>
    %cst_58 = arith.constant 2.500000e-02 : f32
    %68 = vector.broadcast %cst_58 : f32 to vector<1x32xf32>
    %69 = arith.mulf %67, %68 : vector<1x32xf32>
    %70 = arith.addf %65, %69 : vector<1x32xf32>
    %c0_59 = arith.constant 0 : index
    %c0_60 = arith.constant 0 : index
    %c0_61 = arith.constant 0 : index
    %71 = vector.load %arg16[%c0_59, %c0_60, %c0_61] : memref<1x1x32xf32, #tpu.memory_space<vmem>>, vector<1x1x32xf32>
    %72 = vector.shape_cast %71 : vector<1x1x32xf32> to vector<1x32xf32>
    %73 = vector.shape_cast %70 : vector<1x32xf32> to vector<1x1x32xf32>
    tpu.vector_store %arg16[%c0_59, %c0_60, %c0_61], %73 {strides = array<i32>} : memref<1x1x32xf32, #tpu.memory_space<vmem>>, vector<1x1x32xf32>,
    %c0_i32_62 = arith.constant 0 : i32
    %74 = arith.cmpi eq, %arg1, %c0_i32_62 : i32
    %75 = arith.extui %74 : i1 to i32
    %c0_i32_63 = arith.constant 0 : i32
    %76 = arith.cmpi ne, %75, %c0_i32_63 : i32
    scf.if %76 {
      %c0_64 = arith.constant 0 : index
      %c0_65 = arith.constant 0 : index
      %c0_66 = arith.constant 0 : index
      %77 = vector.load %arg12[%c0_64, %c0_65, %c0_66] : memref<1x128x32xf32, #tpu.memory_space<vmem>>, vector<1x128x32xf32>
      %78 = vector.shape_cast %77 : vector<1x128x32xf32> to vector<128x32xf32>
      %c0_67 = arith.constant 0 : index
      %c0_68 = arith.constant 0 : index
      %79 = vector.load %arg10[%c0_67, %c0_68] : memref<128x32xf32, #tpu.memory_space<vmem>>, vector<128x32xf32>
      %80 = arith.mulf %78, %79 : vector<128x32xf32>
      %c0_69 = arith.constant 0 : index
      %c0_70 = arith.constant 0 : index
      %c0_71 = arith.constant 0 : index
      %81 = vector.load %arg12[%c0_69, %c0_70, %c0_71] : memref<1x128x32xf32, #tpu.memory_space<vmem>>, vector<1x128x32xf32>
      %82 = vector.shape_cast %81 : vector<1x128x32xf32> to vector<128x32xf32>
      %83 = vector.shape_cast %80 : vector<128x32xf32> to vector<1x128x32xf32>
      tpu.vector_store %arg12[%c0_69, %c0_70, %c0_71], %83 {strides = array<i32>} : memref<1x128x32xf32, #tpu.memory_space<vmem>>, vector<1x128x32xf32>,
      %c0_72 = arith.constant 0 : index
      %c0_73 = arith.constant 0 : index
      %c0_74 = arith.constant 0 : index
      %84 = vector.load %arg13[%c0_72, %c0_73, %c0_74] : memref<1x32x32xf32, #tpu.memory_space<vmem>>, vector<1x32x32xf32>
      %85 = vector.shape_cast %84 : vector<1x32x32xf32> to vector<32x32xf32>
      %c0_75 = arith.constant 0 : index
      %c0_76 = arith.constant 0 : index
      %86 = vector.load %arg11[%c0_75, %c0_76] : memref<32x32xf32, #tpu.memory_space<vmem>>, vector<32x32xf32>
      %87 = arith.mulf %85, %86 : vector<32x32xf32>
      %c0_77 = arith.constant 0 : index
      %c0_78 = arith.constant 0 : index
      %c0_79 = arith.constant 0 : index
      %88 = vector.load %arg13[%c0_77, %c0_78, %c0_79] : memref<1x32x32xf32, #tpu.memory_space<vmem>>, vector<1x32x32xf32>
      %89 = vector.shape_cast %88 : vector<1x32x32xf32> to vector<32x32xf32>
      %90 = vector.shape_cast %87 : vector<32x32xf32> to vector<1x32x32xf32>
      tpu.vector_store %arg13[%c0_77, %c0_78, %c0_79], %90 {strides = array<i32>} : memref<1x32x32xf32, #tpu.memory_space<vmem>>, vector<1x32x32xf32>,
    } else {
    }
    return
  }
  func.func @transform_0(%arg0: i32, %arg1: i32) -> (i32, i32, i32) {
    %c0_i32 = arith.constant 0 : i32
    %c0_i32_0 = arith.constant 0 : i32
    return %arg0, %arg1, %c0_i32 : i32, i32, i32
  }
  func.func @transform_1(%arg0: i32, %arg1: i32) -> (i32, i32) {
    %c0_i32 = arith.constant 0 : i32
    %c0_i32_0 = arith.constant 0 : i32
    %c0_i32_1 = arith.constant 0 : i32
    return %c0_i32, %c0_i32_0 : i32, i32
  }
  func.func @transform_2(%arg0: i32, %arg1: i32) -> (i32, i32) {
    %c0_i32 = arith.constant 0 : i32
    %c0_i32_0 = arith.constant 0 : i32
    %c0_i32_1 = arith.constant 0 : i32
    return %c0_i32, %c0_i32_0 : i32, i32
  }
  func.func @transform_3(%arg0: i32, %arg1: i32) -> (i32, i32) {
    %c0_i32 = arith.constant 0 : i32
    %c0_i32_0 = arith.constant 0 : i32
    %c0_i32_1 = arith.constant 0 : i32
    return %c0_i32, %c0_i32_0 : i32, i32
  }
  func.func @transform_4(%arg0: i32, %arg1: i32) -> (i32, i32) {
    %c0_i32 = arith.constant 0 : i32
    %c0_i32_0 = arith.constant 0 : i32
    %c0_i32_1 = arith.constant 0 : i32
    return %c0_i32, %c0_i32_0 : i32, i32
  }
  func.func @transform_5(%arg0: i32, %arg1: i32) -> (i32, i32) {
    %c0_i32 = arith.constant 0 : i32
    %c0_i32_0 = arith.constant 0 : i32
    %c0_i32_1 = arith.constant 0 : i32
    return %c0_i32, %c0_i32_0 : i32, i32
  }
  func.func @transform_6(%arg0: i32, %arg1: i32) -> (i32, i32) {
    %c0_i32 = arith.constant 0 : i32
    %c0_i32_0 = arith.constant 0 : i32
    %c0_i32_1 = arith.constant 0 : i32
    return %c0_i32, %c0_i32_0 : i32, i32
  }
  func.func @transform_7(%arg0: i32, %arg1: i32) -> (i32, i32) {
    %c0_i32 = arith.constant 0 : i32
    %c0_i32_0 = arith.constant 0 : i32
    %c0_i32_1 = arith.constant 0 : i32
    return %c0_i32, %c0_i32_0 : i32, i32
  }
  func.func @transform_8(%arg0: i32, %arg1: i32) -> (i32, i32) {
    %c0_i32 = arith.constant 0 : i32
    %c0_i32_0 = arith.constant 0 : i32
    %c0_i32_1 = arith.constant 0 : i32
    return %c0_i32, %c0_i32_0 : i32, i32
  }
  func.func @transform_9(%arg0: i32, %arg1: i32) -> (i32, i32) {
    %c0_i32 = arith.constant 0 : i32
    %c0_i32_0 = arith.constant 0 : i32
    %c0_i32_1 = arith.constant 0 : i32
    return %c0_i32, %c0_i32_0 : i32, i32
  }
  func.func @transform_10(%arg0: i32, %arg1: i32) -> (i32, i32, i32) {
    %c0_i32 = arith.constant 0 : i32
    %c0_i32_0 = arith.constant 0 : i32
    %c0_i32_1 = arith.constant 0 : i32
    return %arg0, %c0_i32, %c0_i32_0 : i32, i32, i32
  }
  func.func @transform_11(%arg0: i32, %arg1: i32) -> (i32, i32, i32) {
    %c0_i32 = arith.constant 0 : i32
    %c0_i32_0 = arith.constant 0 : i32
    %c0_i32_1 = arith.constant 0 : i32
    return %arg0, %c0_i32, %c0_i32_0 : i32, i32, i32
  }
  func.func @transform_12(%arg0: i32, %arg1: i32) -> (i32, i32, i32) {
    %c0_i32 = arith.constant 0 : i32
    %c0_i32_0 = arith.constant 0 : i32
    %c0_i32_1 = arith.constant 0 : i32
    return %arg0, %c0_i32, %c0_i32_0 : i32, i32, i32
  }
  func.func @transform_13(%arg0: i32, %arg1: i32) -> (i32, i32, i32) {
    %c0_i32 = arith.constant 0 : i32
    %c0_i32_0 = arith.constant 0 : i32
    %c0_i32_1 = arith.constant 0 : i32
    return %arg0, %c0_i32, %c0_i32_0 : i32, i32, i32
  }
  func.func @transform_14(%arg0: i32, %arg1: i32) -> (i32, i32, i32) {
    %c0_i32 = arith.constant 0 : i32
    %c0_i32_0 = arith.constant 0 : i32
    %c0_i32_1 = arith.constant 0 : i32
    return %arg0, %c0_i32, %c0_i32_0 : i32, i32, i32
  }
}

</mosaic_0001>

<bundles_post_ra>
// kernel: tpu_custom_call.1
= control target key start
LH: loop header
LB: loop body
LE: loop exit
PB: predicated region body
PF: predicated region fallthrough
CT: control target
= control target key end

     0   :  { %s2613_s0 = inlined_call_operand.vmem [shape: f32[2,40,32], index: 0, kind: input, shape index: {}]   ;;  %s2614_s1 = inlined_call_operand.vmem [shape: f32[32,32], index: 1, kind: input, shape index: {}]   ;;  %s2615_s2 = inlined_call_operand.vmem [shape: f32[1,32], index: 2, kind: input, shape index: {}]   ;;  %s2616_s3 = inlined_call_operand.vmem [shape: f32[32,32], index: 3, kind: input, shape index: {}]   ;;  %s2617_s4 = inlined_call_operand.vmem [shape: f32[1,32], index: 4, kind: input, shape index: {}]   ;;  %s2618_s5 = inlined_call_operand.vmem [shape: f32[8,32], index: 5, kind: input, shape index: {}]   ;;  %s2619_s6 = inlined_call_operand.vmem [shape: f32[32,128], index: 6, kind: input, shape index: {}]   ;;  %s2620_s7 = inlined_call_operand.vmem [shape: f32[32,128], index: 7, kind: input, shape index: {}]   ;;  %s2621_s8 = inlined_call_operand.vmem [shape: f32[128,32], index: 8, kind: input, shape index: {}]   ;;  %s2622_s9 = inlined_call_operand.vmem [shape: f32[32,32], index: 9, kind: input, shape index: {}]   ;;  %s2623_s10 = inlined_call_operand.vmem [shape: f32[2,128,32], index: 10, kind: output, shape index: {0}]   ;;  %s2624_s11 = inlined_call_operand.hbm [shape: f32[2,32,32], index: 11, kind: output, shape index: {1}]   ;;  %s2625_s12 = inlined_call_operand.hbm [shape: f32[2,1,32], index: 12, kind: output, shape index: {2}]   ;;  %s2626_s13 = inlined_call_operand.hbm [shape: f32[2,1,128], index: 13, kind: output, shape index: {3}]   ;;  %s2627_s14 = inlined_call_operand.hbm [shape: f32[2,1,32], index: 14, kind: output, shape index: {4}]  }
   0x1   :  { %2632 = sst [smem:[#allocation15_spill]] %s2613_s0 }
   0x2   :  { %2633 = sst [smem:[#allocation16_spill]] %s2614_s1 }
   0x3   :  { %2634 = sst [smem:[#allocation17_spill]] %s2615_s2 }
   0x4   :  { %2635 = sst [smem:[#allocation18_spill]] %s2616_s3 }
   0x5   :  { %2636 = sst [smem:[#allocation19_spill]] %s2617_s4 }
   0x6   :  { %2637 = sst [smem:[#allocation20_spill]] %s2618_s5 }
   0x7   :  { %2638 = sst [smem:[#allocation21_spill]] %s2619_s6 }
   0x8   :  { %2639 = sst [smem:[#allocation22_spill]] %s2620_s7 }
   0x9   :  { %20 = vsyncpa [#allocation3], 0 }
   0xa   :  { %22 = vsyncpa [#allocation3 + $0x1], 0 }
   0xb   :  { %23 = vsyncpa [#allocation5], 0 }
   0xc   :  { %25 = vsyncpa [#allocation5 + $0x1], 0 }
   0xd   :  { %26 = vsyncpa [#allocation8], 0 }
   0xe   :  { %28 = vsyncpa [#allocation8 + $0x1], 0  ;;  %s2011_s29 = smov 0   ;;  %s2013_s30 = smov 0  }
   0xf   :  { %s2015_s15 = smov 0   ;;  %s2017_s16 = smov 0  }
  0x10   :  { %s2019_s17 = smov 0   ;;  %s2021_s18 = smov 0  }
  0x11 LB: > { %2640 = sst [smem:[#allocation12_spill]] %s1927_s17  ;;  %s2628_s19 = sadd.s32 4294967295, %s1931_s18   ;;  %s1931_s18 = sphi %s2021_s18, %s34_s18   ;;  %s1927_s17 = sphi %s2019_s17, %s2657_s17   ;;  %s1923_s16 = sphi %s2017_s16, %s2656_s16   ;;  %s1919_s15 = sphi %s2015_s15, %s2660_s15   ;;  %s1915_s30 = sphi %s2013_s30, %s2659_s30   ;;  %s1911_s29 = sphi %s2011_s29, %s2658_s29  }
  0x12   : > { %s2629_s20 = sadd.s32 4294967294, %s1931_s18   ;;  %s46_s21 = sadd.s32 1, %s1927_s17 }
  0x13   : > { %s296_s22 = sadd.s32 1, %s1919_s15  ;;  %p48_p0 = scmp.ge.s32.totalorder %s46_s21, 2 }
  0x14   : > { %p306_p1 = scmp.ne.s32.totalorder %s1919_s15, %s1915_s30  ;;  %p307_p2 = scmp.eq.s32.totalorder %s2628_s19, 1 }
  0x15   : > { %p312_p3 = scmp.ne.s32.totalorder %s1915_s30, %s1911_s29  ;;  %s2662_s21 = smov (%p48_p0, %s46_s21), 0 }
  0x16   : > { %2641 = sst [smem:[#allocation13_spill]] %s2662_s21  ;;  %p2053_p4 = por %p307_p2, %p306_p1 }
  0x17   : > { %p313_p5 = scmp.eq.s32.totalorder %s2629_s20, 1  ;;  %s293_s24 = ssub.s32 %s1927_s17, %s2662_s21 }
  0x18   : > { %p1602_p6 = scmp.ge.s32.totalorder %s1931_s18, 1  ;;  %p294_p7 = scmp.eq.s32.totalorder %s293_s24, 0 }
  0x19   : > { %p2062_p8 = por %p313_p5, %p312_p3  ;;  %p449_p9 = scmp.lt.s32.totalorder %s1931_s18, 3 }
  0x1a   : > { %s2068_s26 = scalar_select %p294_p7, %s1919_s15, %s296_s22  }
  0x1b   : > { %p450_p10 = pnand %p1602_p6, %p449_p9 }
  0x1c   : > { %2644 = sst [smem:[#allocation14_spill]] %s2068_s26  ;;  %p517_p11 = scmp.lt.s32.totalorder (!%p450_p10), %s1923_s16, 1 }
  0x1d   : > { %453 = sbr.rel (%p450_p10) target bundleno = 1036 (0x40c), region = 60  ;;  %s2645_s1 = sld [smem:[#allocation16_spill]] (!%p450_p10) }
  0x1e   : > { %s2646_s0 = sld [smem:[#allocation15_spill]] (!%p450_p10)  ;;  %s1388_s28 = scalar_lea.hbm (!%p450_p10), %s2625_s12, %s1923_s16 }
  0x1f   : > { %s2647_s5 = sld [smem:[#allocation20_spill]] (!%p450_p10) }
  0x20   : > { %s2648_s2 = sld [smem:[#allocation17_spill]] (!%p450_p10) }
  0x21   : > { %s2649_s6 = sld [smem:[#allocation21_spill]] (!%p450_p10) }
  0x22   : > { %s2081_s22 = scalar_select %p517_p11, %s1923_s16, 1  ;;  %vm535_vm0 = vcmask 261120   ;;  %vm772_vm3 = vcmask 64512  }
  0x23   : > { %v568_v0 = vld [vmem:[%s2645_s1 + $0x18] sm:$0xff]  ;;  %v567_v1 = vld [vmem:[%s2645_s1 + $0x10] sm:$0xff]  ;;  %v566_v2 = vld [vmem:[%s2645_s1 + $0x8] sm:$0xff]  ;;  %s2650_s7 = sld [smem:[#allocation22_spill]] }
  0x24   : > { %601 = vmatpush.msra.mxu1 %v568_v0  ;;  %v565_v3 = vld [vmem:[%s2645_s1] sm:$0xff]  ;;  %s1675_s27 = smul.u32 40, %s2081_s22  ;;  %s2651_s3 = sld [smem:[#allocation18_spill]] }
  0x25   : > { %v661_v9 = vld [vmem:[%s2647_s5] sm:$0xff]  ;;  %s2235_s1 = sand.u32 1, %s1915_s30   ;;  %s2652_s4 = sld [smem:[#allocation19_spill]] }
  0x26   : > { %602 = vmatpush.msra.mxu1 %v567_v1  ;;  %s524_s20 = scalar_lea.vmem %s2646_s0, %s1675_s27  ;;  %1617 = vmatpush.xpose.msk.msra.mxu2 %vm535_vm0, %v661_v9  ;;  %v1749_v10 = vld [vmem:[%s2648_s2] ss:$0 sm:$0xff]  ;;  %s1663_s0 = sshll.u32 %s2081_s22, 7 }
  0x27   : > { %v2090_v4 = vld [vmem:[%s524_s20] sm:$0xff]  ;;  %v2094_v5 = vld [vmem:[%s524_s20 + $0x8] sm:$0xff]  ;;  %v2098_v6 = vld [vmem:[%s524_s20 + $0x10] sm:$0xff]  ;;  %803 = vmatpush.msra.mxu3 %v661_v9  ;;  %s2179_s24 = scalar_lea.vmem %s2623_s10, %s1663_s0  ;;  %s2260_s26 = scalar_lea.vmem [#allocation7], %s2235_s1 }
  0x28   : > { %603 = vmatpush.msra.mxu1 %v566_v2  ;;  %v2102_v7 = vld [vmem:[%s524_s20 + $0x18] sm:$0xff]  ;;  %v2106_v8 = vld [vmem:[%s524_s20 + $0x20] sm:$0xff]  ;;  %v837_v44 = vld [vmem:[%s2649_s6 + $0x10] sm:$0xff]  ;;  %s2276_s27 = scalar_lea.vmem [#allocation6], %s2235_s1  ;;  %s2291_s19 = scalar_lea.vmem [#allocation4], %s2235_s1 }
  0x29   : > { %v838_v42 = vld [vmem:[%s2649_s6 + $0x18] sm:$0xff]  ;;  %v888_v46 = vld [vmem:[%s2650_s7 + $0x10] sm:$0xff]  ;;  %v836_v47 = vld [vmem:[%s2649_s6 + $0x8] sm:$0xff]  ;;  %s1603_s20 = sshll.u32 %s2235_s1, 5  ;;  %s2653_s2 = sadd.s32 4294967295, %s1931_s18  }
  0x2a   : > { %604 = vmatpush.msra.mxu1 %v565_v3  ;;  %v889_v43 = vld [vmem:[%s2650_s7 + $0x18] sm:$0xff]  ;;  %866 = vmatpush.msrb.mxu3 %v838_v42  ;;  %v887_v48 = vld [vmem:[%s2650_s7 + $0x8] sm:$0xff]  ;;  %v835_v53 = vld [vmem:[%s2649_s6] sm:$0xff]  ;;  %s2319_s17 = scalar_lea.vmem [#allocation2], %s1603_s20  ;;  %s1392_s5 = sshll.u32 %s1388_s28, 4  ;;  %s1393_s5 = int_to_ptr.hbm [resolvable:$true] %s1392_s5 }
  0x2b   : > { %1607 = vmatmul.msk.f32.vlgmr.msra.gmra.mxu1 %vm535_vm0, %v2090_v4  ;;  %902 = vmatpush.msrb.mxu2 %v889_v43  ;;  %v886_v54 = vld [vmem:[%s2650_s7] sm:$0xff]  ;;  %s1775_s0 = sshra.s32 %s1393_s5, 4  ;;  %s1776_s0 = int_to_ptr.hbm [resolvable:$true] %s1775_s0 }
  0x2c   : > { %867 = vmatpush.msrb.mxu3 %v837_v44  ;;  %s1777_s22 = scalar_lea.hbm %s1776_s0, 1  ;;  %p1782_p1 = scmp.lt.s32.totalorder %s1776_s0, %s2625_s12 }
  0x2d   : > { %903 = vmatpush.msrb.mxu2 %v888_v46  ;;  %p1778_p12 = scmp.ne.s32.totalorder %s1776_s0, %s1777_s22 }
  0x2e   : > { %868 = vmatpush.msrb.mxu3 %v836_v47 }
  0x2f   : > { %904 = vmatpush.msrb.mxu2 %v887_v48  ;;  %p1779_p13 = pnand %p1778_p12, %p2053_p4 }
  0x30   : > { %869 = vmatpush.msrb.mxu3 %v835_v53 }
  0x31   : > { %905 = vmatpush.msrb.mxu2 %v886_v54  ;;  %p1780_p0 = pneg %p1779_p13 }
  0x33   : > { %1608 = vmatmul.msk.f32.gmra.mxu1 %vm535_vm0, %v2094_v5 }
  0x3b   : > { %1609 = vmatmul.msk.f32.gmra.mxu1 %vm535_vm0, %v2098_v6 }
  0x43   : > { %1610 = vmatmul.msk.f32.gmra.mxu1 %vm535_vm0, %v2102_v7 }
  0x4b   : > { %1611 = vmatmul.msk.f32.gmra.mxu1 %vm535_vm0, %v2106_v8 }
  0xa8   : > { %v606_v11 = vpop.f32.mrf.mxu1 }
  0xa9   : > { %v2117_v12 = vadd.f32 %v1749_v10, %v606_v11 }
  0xab   : > { %v662_v13 = vmul.f32 %v2117_v12, %v2117_v12 }
  0xad   : > { %1618 = vmatmul.msk.f32.vlgmr.msra.gmra.mxu2 %vm535_vm0, %v662_v13 }
  0xb0   : > { %v609_v14 = vpop.f32.mrf.mxu1 }
  0xb1   : > { %v2122_v15 = vadd.f32 %v1749_v10, %v609_v14 }
  0xb3   : > { %v663_v16 = vmul.f32 %v2122_v15, %v2122_v15 }
  0xb5   : > { %1619 = vmatmul.msk.f32.gmra.mxu2 %vm535_vm0, %v663_v16 }
  0xb8   : > { %v612_v17 = vpop.f32.mrf.mxu1 }
  0xb9   : > { %v2127_v18 = vadd.f32 %v1749_v10, %v612_v17 }
  0xbb   : > { %v664_v19 = vmul.f32 %v2127_v18, %v2127_v18 }
  0xbd   : > { %1620 = vmatmul.msk.f32.gmra.mxu2 %vm535_vm0, %v664_v19 }
  0xc0   : > { %v615_v20 = vpop.f32.mrf.mxu1 }
  0xc1   : > { %v2132_v21 = vadd.f32 %v1749_v10, %v615_v20 }
  0xc3   : > { %v665_v22 = vmul.f32 %v2132_v21, %v2132_v21 }
  0xc5   : > { %1621 = vmatmul.msk.f32.gmra.mxu2 %vm535_vm0, %v665_v22 }
  0xc8   : > { %v618_v23 = vpop.f32.mrf.mxu1 }
  0xc9   : > { %v2137_v24 = vadd.f32 %v1749_v10, %v618_v23 }
  0xcb   : > { %v666_v25 = vmul.f32 %v2137_v24, %v2137_v24 }
  0xcd   : > { %1622 = vmatmul.msk.f32.gmra.mxu2 %vm535_vm0, %v666_v25 }
 0x130   : > { %v702_v26 = vpop.f32.mrf.mxu2 }
 0x131   : > { %v717_v27 = vmax.f32 %v702_v26, 1e-24 }
 0x133   : > { %1751 = vrsqrt.f32 %v717_v27  ;;  %vm728_vm2 = vweird.f32 %v717_v27 }
 0x138   : > { %v705_v28 = vpop.f32.mrf.mxu2 }
 0x139   : > { %v1752_v29 = vpop.eup %1751  ;;  %v718_v30 = vmax.f32 %v705_v28, 1e-24 }
 0x13a   : > { %v723_v31 = vmul.f32 %v1752_v29, %v717_v27  ;;  %vm729_vm1 = vweird.f32 %v1752_v29 }
 0x13b   : > { %1753 = vrsqrt.f32 %v718_v30  ;;  %vm730_vm4 = vmor %vm728_vm2, %vm729_vm1  ;;  %vm738_vm6 = vweird.f32 %v718_v30  ;;  %vm556_vm2 = vcmask 253952  }
 0x13c   : > { %v724_v32 = vmul.f32 %v1752_v29, %v723_v31  ;;  %v1933_v31 = vmov 0.0  }
 0x13d   : > { %536 = vst.msk [vmem:[%s2179_s24] sm:$0xff] %vm535_vm0, %v1933_v31 }
 0x13e   : > { %v725_v33 = vmul.f32 0.5, %v724_v32  ;;  %537 = vst.msk [vmem:[%s2179_s24 + $0x8] sm:$0xff] %vm535_vm0, %v1933_v31 }
 0x13f   : > { %538 = vst.msk [vmem:[%s2179_s24 + $0x10] sm:$0xff] %vm535_vm0, %v1933_v31 }
 0x140   : > { %v726_v34 = vsub.f32 1.5, %v725_v33  ;;  %v708_v35 = vpop.f32.mrf.mxu2  ;;  %v622_v33 = vld [vmem:[%s2651_s3 + $0x8] sm:$0xff]  ;;  %539 = vst.msk [vmem:[%s2179_s24 + $0x18] sm:$0xff] %vm535_vm0, %v1933_v31 }
 0x141   : > { %v1754_v36 = vpop.eup %1753  ;;  %v719_v37 = vmax.f32 %v708_v35, 1e-24  ;;  %540 = vst.msk [vmem:[%s2179_s24 + $0x20] sm:$0xff] %vm535_vm0, %v1933_v31 }
 0x142   : > { %v733_v38 = vmul.f32 %v1754_v36, %v718_v30  ;;  %v727_v39 = vmul.f32 %v1752_v29, %v726_v34  ;;  %vm739_vm5 = vweird.f32 %v1754_v36  ;;  %541 = vst.msk [vmem:[%s2179_s24 + $0x28] sm:$0xff] %vm535_vm0, %v1933_v31 }
 0x143   : > { %1755 = vrsqrt.f32 %v719_v37  ;;  %vm740_vm7 = vmor %vm738_vm6, %vm739_vm5  ;;  %vm748_vm9 = vweird.f32 %v719_v37  ;;  %542 = vst.msk [vmem:[%s2179_s24 + $0x30] sm:$0xff] %vm535_vm0, %v1933_v31 }
 0x144   : > { %v734_v40 = vmul.f32 %v1754_v36, %v733_v38  ;;  %v731_v41 = vsel %vm730_vm4, %v1752_v29, %v727_v39  ;;  %543 = vst.msk [vmem:[%s2179_s24 + $0x38] sm:$0xff] %vm535_vm0, %v1933_v31 }
 0x145   : > { %1623 = vmatmul.msk.f32.vlgmr.msra.gmra.mxu3 %vm772_vm3, %v731_v41  ;;  %544 = vst.msk [vmem:[%s2179_s24 + $0x40] sm:$0xff] %vm535_vm0, %v1933_v31 }
 0x146   : > { %v735_v45 = vmul.f32 0.5, %v734_v40  ;;  %545 = vst.msk [vmem:[%s2179_s24 + $0x48] sm:$0xff] %vm535_vm0, %v1933_v31 }
 0x147   : > { %546 = vst.msk [vmem:[%s2179_s24 + $0x50] sm:$0xff] %vm535_vm0, %v1933_v31 }
 0x148   : > { %v736_v49 = vsub.f32 1.5, %v735_v45  ;;  %v711_v50 = vpop.f32.mrf.mxu2  ;;  %547 = vst.msk [vmem:[%s2179_s24 + $0x58] sm:$0xff] %vm535_vm0, %v1933_v31 }
 0x149   : > { %v1756_v51 = vpop.eup %1755  ;;  %v720_v52 = vmax.f32 %v711_v50, 1e-24  ;;  %548 = vst.msk [vmem:[%s2179_s24 + $0x60] sm:$0xff] %vm535_vm0, %v1933_v31 }
 0x14a   : > { %v743_v55 = vmul.f32 %v1756_v51, %v719_v37  ;;  %v737_v56 = vmul.f32 %v1754_v36, %v736_v49  ;;  %vm749_vm8 = vweird.f32 %v1756_v51  ;;  %549 = vst.msk [vmem:[%s2179_s24 + $0x68] sm:$0xff] %vm535_vm0, %v1933_v31 }
 0x14b   : > { %1757 = vrsqrt.f32 %v720_v52  ;;  %vm750_vm10 = vmor %vm748_vm9, %vm749_vm8  ;;  %vm758_vm12 = vweird.f32 %v720_v52  ;;  %550 = vst.msk [vmem:[%s2179_s24 + $0x70] sm:$0xff] %vm535_vm0, %v1933_v31 }
 0x14c   : > { %v744_v57 = vmul.f32 %v1756_v51, %v743_v55  ;;  %v741_v58 = vsel %vm740_vm7, %v1754_v36, %v737_v56  ;;  %v621_v36 = vld [vmem:[%s2651_s3] sm:$0xff]  ;;  %551 = vst.msk [vmem:[%s2179_s24 + $0x78] sm:$0xff] %vm535_vm0, %v1933_v31 }
 0x14d   : > { %1624 = vmatmul.msk.f32.gmra.mxu3 %vm772_vm3, %v741_v58  ;;  %559 = vst.msk [vmem:[%s2260_s26] sm:$0x1] %vm556_vm2, %v1933_v31 }
 0x14e   : > { %v745_v59 = vmul.f32 0.5, %v744_v57  ;;  %558 = vst [vmem:[%s2276_s27] sm:$0x1] %v1933_v31 }
 0x14f   : > { %557 = vst.msk [vmem:[%s2291_s19] sm:$0x1] %vm556_vm2, %v1933_v31 }
 0x150   : > { %v746_v60 = vsub.f32 1.5, %v745_v59  ;;  %v714_v61 = vpop.f32.mrf.mxu2  ;;  %552 = vst.msk [vmem:[%s2319_s17] sm:$0xff] %vm535_vm0, %v1933_v31 }
 0x151   : > { %v1758_v62 = vpop.eup %1757  ;;  %v721_v63 = vmax.f32 %v714_v61, 1e-24  ;;  %553 = vst.msk [vmem:[%s2319_s17 + $0x8] sm:$0xff] %vm535_vm0, %v1933_v31 }
 0x152   : > { %v753_v0 = vmul.f32 %v1758_v62, %v720_v52  ;;  %v747_v1 = vmul.f32 %v1756_v51, %v746_v60  ;;  %vm759_vm11 = vweird.f32 %v1758_v62  ;;  %554 = vst.msk [vmem:[%s2319_s17 + $0x10] sm:$0xff] %vm535_vm0, %v1933_v31 }
 0x153   : > { %1759 = vrsqrt.f32 %v721_v63  ;;  %vm760_vm13 = vmor %vm758_vm12, %vm759_vm11  ;;  %vm768_vm15 = vweird.f32 %v721_v63  ;;  %555 = vst.msk [vmem:[%s2319_s17 + $0x18] sm:$0xff] %vm535_vm0, %v1933_v31  ;;  %v928_v31 = vld [vmem:[%s2179_s24 + $0x8] sm:$0xff] }
 0x154   : > { %v754_v2 = vmul.f32 %v1758_v62, %v753_v0  ;;  %v751_v3 = vsel %vm750_vm10, %v1756_v51, %v747_v1  ;;  %v1239_v53 = vld [vmem:[%s2260_s26] sm:$0x1] }
 0x155   : > { %1625 = vmatmul.msk.f32.gmra.mxu3 %vm772_vm3, %v751_v3  ;;  %v1750_v0 = vld [vmem:[%s2652_s4] ss:$0 sm:$0xff]  ;;  %s1390_s4 = sshll.u32 %s2291_s19, 4  ;;  %s1391_s4 = int_to_ptr.vmem [resolvable:$true] %s1390_s4 }
 0x156   : > { %v755_v9 = vmul.f32 0.5, %v754_v2 }
 0x158   : > { %v756_v10 = vsub.f32 1.5, %v755_v9 }
 0x159   : > { %v1760_v11 = vpop.eup %1759 }
 0x15a   : > { %v763_v13 = vmul.f32 %v1760_v11, %v721_v63  ;;  %v757_v14 = vmul.f32 %v1758_v62, %v756_v10  ;;  %vm769_vm14 = vweird.f32 %v1760_v11 }
 0x15b   : > { %vm770_vm1 = vmor %vm768_vm15, %vm769_vm14 }
 0x15c   : > { %v764_v16 = vmul.f32 %v1760_v11, %v763_v13  ;;  %v761_v17 = vsel %vm760_vm13, %v1758_v62, %v757_v14 }
 0x15d   : > { %1626 = vmatmul.msk.f32.gmra.mxu3 %vm772_vm3, %v761_v17 }
 0x15e   : > { %v765_v19 = vmul.f32 0.5, %v764_v16 }
 0x160   : > { %v766_v20 = vsub.f32 1.5, %v765_v19 }
 0x162   : > { %v767_v22 = vmul.f32 %v1760_v11, %v766_v20 }
 0x164   : > { %v771_v23 = vsel %vm770_vm1, %v1760_v11, %v767_v22 }
 0x165   : > { %1627 = vmatmul.msk.f32.gmra.mxu3 %vm772_vm3, %v771_v23  ;;  %vm975_vm3 = vcmask 326656  }
 0x1c8   : > { %v805_v25 = vpop.f32.mrf.mxu3 }
 0x1c9   : > { %v820_v26 = vmul.f32 %v805_v25, %v2117_v12  ;;  %v624_v12 = vld [vmem:[%s2651_s3 + $0x18] sm:$0xff] }
 0x1ca   : > { %641 = vmatpush.msrb.mxu1 %v624_v12 }
 0x1cb   : > { %v825_v27 = vmul.f32 1.4142135, %v820_v26 }
 0x1cd   : > { %1125 = vxpose.xlu1.b32.start [1/5] (short) (narrow) %v825_v27, 32  ;;  %1628 = vmatmul.msk.f32.vlgmr.msrb.gmra.mxu3 %vm535_vm0, %v825_v27 }
 0x1ce   : > { %1633 = vmatmul.msk.f32.vlgmr.msrb.gmra.mxu2 %vm535_vm0, %v825_v27 }
 0x1d0   : > { %v808_v28 = vpop.f32.mrf.mxu3 }
 0x1d1   : > { %v821_v29 = vmul.f32 %v808_v28, %v2122_v15  ;;  %v623_v15 = vld [vmem:[%s2651_s3 + $0x10] sm:$0xff]  ;;  %s2351_s3 = sand.u32 1, %s2653_s2  }
 0x1d2   : > { %642 = vmatpush.msrb.mxu1 %v623_v15  ;;  %s1352_s21 = scalar_lea.sflag [#allocation5], %s2351_s3 }
 0x1d3   : > { %v826_v30 = vmul.f32 1.4142135, %v821_v29 }
 0x1d4   : > { %643 = vmatpush.msrb.mxu1 %v622_v33 }
 0x1d5   : > { %1126 = vxpose.xlu1.b32.cont [2/5] (short) (narrow) %v826_v30, 32  ;;  %1629 = vmatmul.msk.f32.gmra.mxu3 %vm535_vm0, %v826_v30  ;;  %v1241_v38 = vsel %vm535_vm0, %v826_v30, 0.0 }
 0x1d6   : > { %1634 = vmatmul.msk.f32.gmra.mxu2 %vm535_vm0, %v826_v30  ;;  %644 = vmatpush.msrb.mxu1 %v621_v36 }
 0x1d7   : > { %1612 = vmatmul.msk.f32.vlgmr.msrb.gmra.mxu1 %vm535_vm0, %v2090_v4 }
 0x1d8   : > { %v811_v32 = vpop.f32.mrf.mxu3 }
 0x1d9   : > { %v822_v34 = vmul.f32 %v811_v32, %v2127_v18 }
 0x1db   : > { %v827_v35 = vmul.f32 1.4142135, %v822_v34 }
 0x1dd   : > { %1127 = vxpose.xlu1.b32.cont [3/5] (short) (narrow) %v827_v35, 32  ;;  %1630 = vmatmul.msk.f32.gmra.mxu3 %vm535_vm0, %v827_v35  ;;  %v1243_v39 = vsel %vm535_vm0, %v827_v35, 0.0 }
 0x1de   : > { %1635 = vmatmul.msk.f32.gmra.mxu2 %vm535_vm0, %v827_v35 }
 0x1df   : > { %1613 = vmatmul.msk.f32.gmra.mxu1 %vm535_vm0, %v2094_v5 }
 0x1e0   : > { %v814_v18 = vpop.f32.mrf.mxu3 }
 0x1e1   : > { %v823_v37 = vmul.f32 %v814_v18, %v2132_v21  ;;  %v1240_v21 = vsel %vm535_vm0, %v825_v27, 0.0 }
 0x1e2   : > { %v1242_v40 = vadd.f32 %v1241_v38, %v1240_v21 }
 0x1e3   : > { %v828_v4 = vmul.f32 1.4142135, %v823_v37 }
 0x1e4   : > { %v1244_v44 = vadd.f32 %v1243_v39, %v1242_v40  ;;  %v1225_v40 = vld [vmem:[%s2276_s27] sm:$0x1] }
 0x1e5   : > { %1128 = vxpose.xlu1.b32.cont [4/5] (short) (narrow) %v828_v4, 32  ;;  %1631 = vmatmul.msk.f32.gmra.mxu3 %vm535_vm0, %v828_v4  ;;  %v1245_v42 = vsel %vm535_vm0, %v828_v4, 0.0 }
 0x1e6   : > { %1636 = vmatmul.msk.f32.gmra.mxu2 %vm535_vm0, %v828_v4  ;;  %v1246_v46 = vadd.f32 %v1245_v42, %v1244_v44 }
 0x1e7   : > { %1614 = vmatmul.msk.f32.gmra.mxu1 %vm535_vm0, %v2098_v6 }
 0x1e8   : > { %v817_v41 = vpop.f32.mrf.mxu3 }
 0x1e9   : > { %v824_v43 = vmul.f32 %v817_v41, %v2137_v24 }
 0x1eb   : > { %v829_v45 = vmul.f32 1.4142135, %v824_v43 }
 0x1ed   : > { %v1247_v47 = vsel %vm535_vm0, %v829_v45, 0.0  ;;  %1129 = vxpose.xlu1.b32.end [5/5] (short) (narrow) %v829_v45, 32  ;;  %1632 = vmatmul.msk.f32.gmra.mxu3 %vm535_vm0, %v829_v45 }
 0x1ee   : > { %v1248_v5 = vadd.f32 %v1247_v47, %v1246_v46  ;;  %1637 = vmatmul.msk.f32.gmra.mxu2 %vm535_vm0, %v829_v45 }
 0x1ef   : > { %1615 = vmatmul.msk.f32.gmra.mxu1 %vm535_vm0, %v2102_v7 }
 0x1f0   : > { %v1249_v48 = vrot.slane %v1248_v5, 4 }
 0x1f2   : > { %v1250_v49 = vadd.f32 %v1249_v48, %v1248_v5 }
 0x1f4   : > { %v1251_v24 = vrot.slane %v1250_v49, 2 }
 0x1f6   : > { %v1252_v50 = vadd.f32 %v1251_v24, %v1250_v49 }
 0x1f7   : > { %1616 = vmatmul.msk.f32.gmra.mxu1 %vm535_vm0, %v2106_v8 }
 0x1f8   : > { %v1253_v51 = vrot.slane %v1252_v50, 1 }
 0x1fa   : > { %v1254_v52 = vadd.f32 %v1253_v51, %v1252_v50 }
 0x1fc   : > { %v1255_v54 = vmul.f32 0.025, %v1254_v52  ;;  %v1206_v52 = vld [vmem:[%s2291_s19] sm:$0x1] }
 0x1fe   : > { %v1256_v55 = vadd.f32 %v1255_v54, %v1239_v53 }
 0x200   : > { %1257 = vst.msk [vmem:[%s2260_s26] sm:$0x1] %vm556_vm2, %v1256_v55 }
 0x250   : > { %v871_v6 = vpop.f32.mrf.mxu3 }
 0x251   : > { %v907_v56 = vpop.f32.mrf.mxu2 }
 0x252   : > { %v922_v57 = vmul.f32 %v907_v56, %v871_v6 }
 0x254   : > { %943 = vxpose.xlu0.b32.start [1/5] (short) %v922_v57, 128  ;;  %v646_v63 = vpop.f32.mrf.mxu1 }
 0x255   : > { %v647_v8 = vadd.f32 %v1750_v0, %v646_v63 }
 0x257   : > { %v830_v3 = vmul.f32 0.025, %v647_v8 }
 0x258   : > { %v874_v7 = vpop.f32.mrf.mxu3 }
 0x259   : > { %v910_v58 = vpop.f32.mrf.mxu2  ;;  %v1207_v13 = vsel %vm535_vm0, %v830_v3, 0.0 }
 0x25a   : > { %v923_v59 = vmul.f32 %v910_v58, %v874_v7 }
 0x25c   : > { %944 = vxpose.xlu0.b32.cont [2/5] (short) %v923_v59, 128  ;;  %v649_v10 = vpop.f32.mrf.mxu1  ;;  %v1226_v16 = vadd.f32 %v923_v59, %v922_v57 }
 0x25d   : > { %v650_v11 = vadd.f32 %v1750_v0, %v649_v10 }
 0x25f   : > { %v831_v14 = vmul.f32 0.025, %v650_v11 }
 0x260   : > { %v877_v60 = vpop.f32.mrf.mxu3 }
 0x261   : > { %v913_v61 = vpop.f32.mrf.mxu2  ;;  %v1208_v17 = vsel %vm535_vm0, %v831_v14, 0.0 }
 0x262   : > { %v924_v62 = vmul.f32 %v913_v61, %v877_v60  ;;  %v1209_v22 = vadd.f32 %v1208_v17, %v1207_v13  ;;  %v927_v13 = vld [vmem:[%s2179_s24] sm:$0xff] }
 0x263   : > { %v1277_v17 = vld [vmem:[%s2621_s8] sm:$0xff] }
 0x264   : > { %945 = vxpose.xlu0.b32.cont [3/5] (short) %v924_v62, 128  ;;  %v1227_v19 = vadd.f32 %v1226_v16, %v924_v62  ;;  %v652_v27 = vpop.f32.mrf.mxu1 }
 0x265   : > { %v653_v28 = vadd.f32 %v1750_v0, %v652_v27 }
 0x267   : > { %v832_v30 = vmul.f32 0.025, %v653_v28 }
 0x268   : > { %v880_v1 = vpop.f32.mrf.mxu3 }
 0x269   : > { %v916_v2 = vpop.f32.mrf.mxu2  ;;  %v1210_v15 = vsel %vm535_vm0, %v832_v30, 0.0 }
 0x26a   : > { %v925_v9 = vmul.f32 %v916_v2, %v880_v1  ;;  %v1211_v33 = vadd.f32 %v1210_v15, %v1209_v22 }
 0x26c   : > { %946 = vxpose.xlu0.b32.cont [4/5] (short) %v925_v9, 128  ;;  %v1228_v25 = vadd.f32 %v1227_v19, %v925_v9  ;;  %v655_v35 = vpop.f32.mrf.mxu1 }
 0x26d   : > { %v656_v36 = vadd.f32 %v1750_v0, %v655_v35 }
 0x26f   : > { %v833_v37 = vmul.f32 0.025, %v656_v36 }
 0x270   : > { %v883_v20 = vpop.f32.mrf.mxu3 }
 0x271   : > { %v919_v23 = vpop.f32.mrf.mxu2  ;;  %v1212_v38 = vsel %vm535_vm0, %v833_v37, 0.0  ;;  %v1141_v60 = vpop.trf.xlu1 }
 0x272   : > { %v926_v26 = vmul.f32 %v919_v23, %v883_v20  ;;  %v1213_v39 = vadd.f32 %v1212_v38, %v1211_v33 }
 0x274   : > { %v1229_v29 = vadd.f32 %v1228_v25, %v926_v26  ;;  %947 = vxpose.xlu0.b32.end [5/5] (short) %v926_v26, 128  ;;  %v658_v42 = vpop.f32.mrf.mxu1 }
 0x275   : > { %v659_v43 = vadd.f32 %v1750_v0, %v658_v42 }
 0x276   : > { %v1230_v12 = vrot.slane %v1229_v29, 4 }
 0x277   : > { %v834_v45 = vmul.f32 0.025, %v659_v43 }
 0x278   : > { %v1231_v32 = vadd.f32 %v1230_v12, %v1229_v29 }
 0x279   : > { %v1214_v46 = vsel %vm535_vm0, %v834_v45, 0.0  ;;  %1035 = vmatpush.msra.mxu0 %v834_v45  ;;  %1665 = vmatpush.msra.mxu3 %v834_v45  ;;  %v1142_v62 = vpop.trf.xlu1 }
 0x27a   : > { %v1232_v34 = vrot.slane %v1231_v32, 2  ;;  %v1215_v47 = vadd.f32 %v1214_v46, %v1213_v39  ;;  %1180 = vmatpush.msra.mxu1 %v834_v45  ;;  %1670 = vmatpush.msra.mxu2 %v834_v45 }
 0x27b   : > { %1036 = vmatpush.msra.mxu0 %v833_v37  ;;  %1666 = vmatpush.msra.mxu3 %v833_v37 }
 0x27c   : > { %v1233_v18 = vadd.f32 %v1232_v34, %v1231_v32  ;;  %1181 = vmatpush.msra.mxu1 %v833_v37  ;;  %1671 = vmatpush.msra.mxu2 %v833_v37  ;;  %v1216_v5 = vrot.slane %v1215_v47, 4 }
 0x27d   : > { %1037 = vmatpush.msra.mxu0 %v832_v30  ;;  %1667 = vmatpush.msra.mxu3 %v832_v30 }
 0x27e   : > { %v1234_v4 = vrot.slane %v1233_v18, 1  ;;  %1182 = vmatpush.msra.mxu1 %v832_v30  ;;  %1672 = vmatpush.msra.mxu2 %v832_v30  ;;  %v1217_v48 = vadd.f32 %v1216_v5, %v1215_v47 }
 0x27f   : > { %1038 = vmatpush.msra.mxu0 %v831_v14  ;;  %1668 = vmatpush.msra.mxu3 %v831_v14 }
 0x280   : > { %v1235_v21 = vadd.f32 %v1234_v4, %v1233_v18  ;;  %1183 = vmatpush.msra.mxu1 %v831_v14  ;;  %1673 = vmatpush.msra.mxu2 %v831_v14  ;;  %v1218_v49 = vrot.slane %v1217_v48, 2 }
 0x281   : > { %1039 = vmatpush.msra.mxu0 %v830_v3  ;;  %1669 = vmatpush.msra.mxu3 %v830_v3  ;;  %v1143_v0 = vpop.trf.xlu1 }
 0x282   : > { %v1236_v41 = vmul.f32 0.025, %v1235_v21  ;;  %1184 = vmatpush.msra.mxu1 %v830_v3  ;;  %1674 = vmatpush.msra.mxu2 %v830_v3  ;;  %v1219_v24 = vadd.f32 %v1218_v49, %v1217_v48 }
 0x283   : > { %1654 = vmatmul.msk.f32.vlgmr.msra.gmra.mxu1 %vm975_vm3, %v1141_v60  ;;  %1655 = vmatmul.msk.f32.vlgmr.msra.gmra.mxu2 %vm975_vm3, %v1142_v62 }
 0x284   : > { %v1237_v44 = vadd.f32 %v1236_v41, %v1225_v40  ;;  %v1220_v50 = vrot.slane %v1219_v24, 1 }
 0x286   : > { %1238 = vst [vmem:[%s2276_s27] sm:$0x1] %v1237_v44  ;;  %v1221_v51 = vadd.f32 %v1220_v50, %v1219_v24 }
 0x288   : > { %v1222_v53 = vadd.f32 %v1221_v51, %v1206_v52 }
 0x289   : > { %v1144_v1 = vpop.trf.xlu1 }
 0x28a   : > { %1224 = vst.msk [vmem:[%s2291_s19] sm:$0x1] %vm556_vm2, %v1222_v53  ;;  %s1781_s19 = scalar_lea.hbm %s2625_s12, 2 }
 0x28b   : > { %1656 = vmatmul.msk.f32.gmra.mxu2 %vm975_vm3, %v1143_v0  ;;  %p1783_p2 = scmp.lt.s32.totalorder %s1781_s19, %s1777_s22 }
 0x28d   : > { %p1784_p3 = por %p1783_p2, %p1782_p1 }
 0x28f   : > { %p1785_p5 = pnand %p1784_p3, %p1780_p0 }
 0x293   : > { %1657 = vmatmul.msk.f32.gmra.mxu2 %vm975_vm3, %v1144_v1 }
 0x2f8   : > { %v959_v54 = vpop.trf.xlu0 }
 0x2f9   : > { %1638 = vmatmul.msk.f32.vlgmr.msra.gmra.mxu0 %vm975_vm3, %v959_v54 }
 0x300   : > { %v960_v55 = vpop.trf.xlu0 }
 0x301   : > { %1639 = vmatmul.msk.f32.gmra.mxu0 %vm975_vm3, %v960_v55 }
 0x308   : > { %v961_v6 = vpop.trf.xlu0 }
 0x309   : > { %1640 = vmatmul.msk.f32.gmra.mxu0 %vm975_vm3, %v961_v6 }
 0x310   : > { %v962_v56 = vpop.trf.xlu0 }
 0x311   : > { %1641 = vmatmul.msk.f32.gmra.mxu0 %vm975_vm3, %v962_v56 }
 0x318   : > { %v963_v57 = vpop.trf.xlu0 }
 0x319   : > { %1642 = vmatmul.msk.f32.gmra.mxu0 %vm975_vm3, %v963_v57 }
 0x320   : > { %v964_v7 = vpop.trf.xlu0 }
 0x321   : > { %1643 = vmatmul.msk.f32.gmra.mxu0 %vm975_vm3, %v964_v7 }
 0x328   : > { %v965_v58 = vpop.trf.xlu0 }
 0x329   : > { %1644 = vmatmul.msk.f32.gmra.mxu0 %vm975_vm3, %v965_v58 }
 0x330   : > { %v966_v59 = vpop.trf.xlu0 }
 0x331   : > { %1645 = vmatmul.msk.f32.gmra.mxu0 %vm975_vm3, %v966_v59 }
 0x338   : > { %v967_v61 = vpop.trf.xlu0 }
 0x339   : > { %1646 = vmatmul.msk.f32.gmra.mxu0 %vm975_vm3, %v967_v61 }
 0x340   : > { %v968_v63 = vpop.trf.xlu0 }
 0x341   : > { %1647 = vmatmul.msk.f32.gmra.mxu0 %vm975_vm3, %v968_v63 }
 0x348   : > { %v969_v8 = vpop.trf.xlu0 }
 0x349   : > { %1648 = vmatmul.msk.f32.gmra.mxu0 %vm975_vm3, %v969_v8 }
 0x350   : > { %v970_v2 = vpop.trf.xlu0 }
 0x351   : > { %1649 = vmatmul.msk.f32.gmra.mxu0 %vm975_vm3, %v970_v2 }
 0x358   : > { %v971_v3 = vpop.trf.xlu0 }
 0x359   : > { %1650 = vmatmul.msk.f32.vlgmr.msra.gmra.mxu3 %vm975_vm3, %v971_v3 }
 0x360   : > { %v972_v9 = vpop.trf.xlu0 }
 0x361   : > { %1651 = vmatmul.msk.f32.gmra.mxu3 %vm975_vm3, %v972_v9 }
 0x368   : > { %v973_v10 = vpop.trf.xlu0 }
 0x369   : > { %1652 = vmatmul.msk.f32.gmra.mxu3 %vm975_vm3, %v973_v10 }
 0x370   : > { %v974_v11 = vpop.trf.xlu0 }
 0x371   : > { %1653 = vmatmul.msk.f32.gmra.mxu3 %vm975_vm3, %v974_v11 }
 0x376   : > { %v1041_v14 = vpop.f32.mrf.mxu0 }
 0x377   : > { %v1089_v16 = vadd.f32 %v1041_v14, %v927_v13 }
 0x379   : > { %1105 = vst.msk [vmem:[%s2179_s24] sm:$0xff] %vm535_vm0, %v1089_v16 }
 0x37e   : > { %v1044_v19 = vpop.f32.mrf.mxu0 }
 0x37f   : > { %v1090_v20 = vadd.f32 %v1044_v19, %v928_v31 }
 0x380   : > { %v1261_v22 = vld [vmem:[%s2179_s24] sm:$0xff] }
 0x381   : > { %v1293_v23 = vmul.f32 %v1277_v17, %v1261_v22  ;;  %1106 = vst.msk [vmem:[%s2179_s24 + $0x8] sm:$0xff] %vm535_vm0, %v1090_v20 }
 0x382   : > { %1788 = shalt.err (!%p1785_p5)
}
 0x383   : > { %1677 = dma.vmem_to_hbm [thread:$0]  (%p2053_p4), %s1391_s4, 16, %s1393_s5, %s1352_s21   ;;  %1309 = vst.msk [vmem:[%s2179_s24] sm:$0xff] %vm535_vm0, %v1293_v23  ;;  %v929_v25 = vld [vmem:[%s2179_s24 + $0x10] sm:$0xff]  ;;  %v1278_v26 = vld [vmem:[%s2621_s8 + $0x8] sm:$0xff] }
 0x384   : > { %s1401_s22 = scalar_lea.hbm %s2626_s13, %s1923_s16  ;;  %s1403_s2 = sshll.u32 %s2276_s27, 4  ;;  %s1404_s2 = int_to_ptr.vmem [resolvable:$true] %s1403_s2 }
 0x385   : > { %s1405_s20 = sshll.u32 %s1401_s22, 4  ;;  %s1809_s7 = scalar_lea.hbm %s2626_s13, 2  ;;  %s1406_s20 = int_to_ptr.hbm [resolvable:$true] %s1405_s20 }
 0x386   : > { %v1047_v27 = vpop.f32.mrf.mxu0  ;;  %s1803_s4 = sshra.s32 %s1406_s20, 4  ;;  %s1804_s4 = int_to_ptr.hbm [resolvable:$true] %s1803_s4 }
 0x387   : > { %v1091_v28 = vadd.f32 %v1047_v27, %v929_v25  ;;  %s1805_s5 = scalar_lea.hbm %s1804_s4, 1  ;;  %p1810_p10 = scmp.lt.s32.totalorder %s1804_s4, %s2626_s13 }
 0x388   : > { %v1262_v29 = vld [vmem:[%s2179_s24 + $0x8] sm:$0xff]  ;;  %p1806_p6 = scmp.ne.s32.totalorder %s1804_s4, %s1805_s5  ;;  %p1811_p11 = scmp.lt.s32.totalorder %s1809_s7, %s1805_s5 }
 0x389   : > { %v1294_v30 = vmul.f32 %v1278_v26, %v1262_v29  ;;  %1107 = vst.msk [vmem:[%s2179_s24 + $0x10] sm:$0xff] %vm535_vm0, %v1091_v28 }
 0x38a   : > { %p1807_p7 = pnand %p1806_p6, %p2053_p4  ;;  %p1812_p12 = por %p1811_p11, %p1810_p10 }
 0x38c   : > { %p1808_p9 = pneg %p1807_p7 }
 0x38e   : > { %p1813_p13 = pnand %p1812_p12, %p1808_p9 }
 0x390   : > { %1816 = shalt.err (!%p1813_p13)
}
 0x391   : > { %1678 = dma.vmem_to_hbm [thread:$0]  (%p2053_p4), %s1404_s2, 16, %s1406_s20, %s1352_s21   ;;  %1310 = vst.msk [vmem:[%s2179_s24 + $0x8] sm:$0xff] %vm535_vm0, %v1294_v30  ;;  %v930_v12 = vld [vmem:[%s2179_s24 + $0x18] sm:$0xff] }
 0x392   : > { %s1414_s19 = scalar_lea.hbm %s2627_s14, %s1923_s16  ;;  %s1416_s4 = sshll.u32 %s2260_s26, 4  ;;  %s1417_s4 = int_to_ptr.vmem [resolvable:$true] %s1416_s4 }
 0x393   : > { %s1418_s5 = sshll.u32 %s1414_s19, 4  ;;  %s1360_s6 = scalar_lea.sflag [#allocation8], %s2235_s1  ;;  %s1419_s5 = int_to_ptr.hbm [resolvable:$true] %s1418_s5 }
 0x394   : > { %s1831_s3 = sshra.s32 %s1419_s5, 4  ;;  %s1837_s20 = scalar_lea.hbm %s2627_s14, 2  ;;  %s1832_s3 = int_to_ptr.hbm [resolvable:$true] %s1831_s3 }
 0x395   : > { %s1833_s7 = scalar_lea.hbm %s1832_s3, 1  ;;  %p1838_p3 = scmp.lt.s32.totalorder %s1832_s3, %s2627_s14 }
 0x396   : > { %p1834_p0 = scmp.ne.s32.totalorder %s1832_s3, %s1833_s7  ;;  %p1839_p5 = scmp.lt.s32.totalorder %s1837_s20, %s1833_s7 }
 0x398   : > { %p1835_p1 = pnand %p1834_p0, %p2053_p4  ;;  %p1840_p6 = por %p1839_p5, %p1838_p3 }
 0x39a   : > { %p1836_p2 = pneg %p1835_p1 }
 0x39c   : > { %p1841_p7 = pnand %p1840_p6, %p1836_p2 }
 0x39e   : > { %1844 = shalt.err (!%p1841_p7)
}
 0x39f   : > { %1679 = dma.vmem_to_hbm [thread:$0]  (%p2053_p4), %s1417_s4, 16, %s1419_s5, %s1360_s6   ;;  %v1279_v15 = vld [vmem:[%s2621_s8 + $0x10] sm:$0xff]  ;;  %v1050_v32 = vpop.f32.mrf.mxu0  ;;  %v931_v36 = vld [vmem:[%s2179_s24 + $0x20] sm:$0xff]  ;;  %v1280_v18 = vld [vmem:[%s2621_s8 + $0x18] sm:$0xff]  ;;  %v1186_v56 = vpop.f32.mrf.mxu1 }
 0x3a0   : > { %v1092_v33 = vadd.f32 %v1050_v32, %v930_v12  ;;  %v1263_v34 = vld [vmem:[%s2179_s24 + $0x10] sm:$0xff]  ;;  %v932_v39 = vld [vmem:[%s2179_s24 + $0x28] sm:$0xff]  ;;  %v1281_v40 = vld [vmem:[%s2621_s8 + $0x20] sm:$0xff]  ;;  %v1189_v13 = vpop.f32.mrf.mxu2  ;;  %s1664_s2 = sshll.u32 %s1923_s16, 5  ;;  %s1374_s16 = sshll.u32 %s2319_s17, 4  ;;  %s1375_s16 = int_to_ptr.vmem [resolvable:$true] %s1374_s16 }
 0x3a1   : > { %v1295_v35 = vmul.f32 %v1279_v15, %v1263_v34  ;;  %v933_v45 = vld [vmem:[%s2179_s24 + $0x30] sm:$0xff]  ;;  %v1282_v46 = vld [vmem:[%s2621_s8 + $0x28] sm:$0xff]  ;;  %v934_v24 = vld [vmem:[%s2179_s24 + $0x38] sm:$0xff]  ;;  %s1373_s0 = scalar_lea.hbm %s2624_s11, %s1664_s2  ;;  %s1347_s5 = scalar_lea.sflag [#allocation3], %s2235_s1 }
 0x3a2   : > { %1108 = vst.msk [vmem:[%s2179_s24 + $0x18] sm:$0xff] %vm535_vm0, %v1092_v33  ;;  %v1283_v50 = vld [vmem:[%s2621_s8 + $0x30] sm:$0xff]  ;;  %v935_v55 = vld [vmem:[%s2179_s24 + $0x40] sm:$0xff]  ;;  %v1284_v57 = vld [vmem:[%s2621_s8 + $0x38] sm:$0xff]  ;;  %s1376_s22 = sshll.u32 %s1373_s0, 4  ;;  %s1865_s2 = scalar_lea.hbm %s2624_s11, 64  ;;  %s1377_s22 = int_to_ptr.hbm [resolvable:$true] %s1376_s22 }
 0x3a3   : > { %1311 = vst.msk [vmem:[%s2179_s24 + $0x10] sm:$0xff] %vm535_vm0, %v1295_v35  ;;  %v1121_v6 = vld [vmem:[%s2319_s17] sm:$0xff]  ;;  %v936_v62 = vld [vmem:[%s2179_s24 + $0x48] sm:$0xff]  ;;  %v937_v14 = vld [vmem:[%s2179_s24 + $0x50] sm:$0xff]  ;;  %s1859_s6 = sshra.s32 %s1377_s22, 4  ;;  %s1860_s6 = int_to_ptr.hbm [resolvable:$true] %s1859_s6 }
 0x3a4   : > { %v1198_v58 = vadd.f32 %v1186_v56, %v1121_v6  ;;  %v1329_v63 = vld [vmem:[%s2622_s9] sm:$0xff]  ;;  %v1122_v11 = vld [vmem:[%s2319_s17 + $0x8] sm:$0xff]  ;;  %v1123_v25 = vld [vmem:[%s2319_s17 + $0x10] sm:$0xff]  ;;  %s1861_s3 = scalar_lea.hbm %s1860_s6, 32  ;;  %p1866_p12 = scmp.lt.s32.totalorder %s1860_s6, %s2624_s11 }
 0x3a5   : > { %v1285_v0 = vld [vmem:[%s2621_s8 + $0x40] sm:$0xff]  ;;  %v1199_v16 = vadd.f32 %v1189_v13, %v1122_v11  ;;  %v1286_v31 = vld [vmem:[%s2621_s8 + $0x48] sm:$0xff]  ;;  %v938_v27 = vld [vmem:[%s2179_s24 + $0x58] sm:$0xff]  ;;  %p1862_p9 = scmp.ne.s32.totalorder %s1860_s6, %s1861_s3  ;;  %p1867_p13 = scmp.lt.s32.totalorder %s1865_s2, %s1861_s3 }
 0x3a6   : > { %1202 = vst.msk [vmem:[%s2319_s17] sm:$0xff] %vm535_vm0, %v1198_v58  ;;  %v1330_v23 = vld [vmem:[%s2622_s9 + $0x8] sm:$0xff]  ;;  %v1287_v30 = vld [vmem:[%s2621_s8 + $0x50] sm:$0xff] }
 0x3a7   : > { %v1053_v37 = vpop.f32.mrf.mxu0  ;;  %1203 = vst.msk [vmem:[%s2319_s17 + $0x8] sm:$0xff] %vm535_vm0, %v1199_v16  ;;  %v1331_v35 = vld [vmem:[%s2622_s9 + $0x10] sm:$0xff]  ;;  %p1863_p10 = pnand %p1862_p9, %p2053_p4  ;;  %p1868_p0 = por %p1867_p13, %p1866_p12 }
 0x3a8   : > { %v1093_v4 = vadd.f32 %v1053_v37, %v931_v36  ;;  %v1192_v26 = vpop.f32.mrf.mxu2  ;;  %v1124_v36 = vld [vmem:[%s2319_s17 + $0x18] sm:$0xff] }
 0x3a9   : > { %v1264_v38 = vld [vmem:[%s2179_s24 + $0x18] sm:$0xff]  ;;  %v1200_v28 = vadd.f32 %v1192_v26, %v1123_v25  ;;  %p1864_p11 = pneg %p1863_p10 }
 0x3aa   : > { %v1296_v21 = vmul.f32 %v1280_v18, %v1264_v38  ;;  %1109 = vst.msk [vmem:[%s2179_s24 + $0x20] sm:$0xff] %vm535_vm0, %v1093_v4  ;;  %v1288_v38 = vld [vmem:[%s2621_s8 + $0x58] sm:$0xff] }
 0x3ab   : > { %1204 = vst.msk [vmem:[%s2319_s17 + $0x10] sm:$0xff] %vm535_vm0, %v1200_v28  ;;  %p1869_p1 = pnand %p1868_p0, %p1864_p11 }
 0x3ac   : > { %1312 = vst.msk [vmem:[%s2179_s24 + $0x18] sm:$0xff] %vm535_vm0, %v1296_v21 }
 0x3ad   : > { %v1325_v2 = vld [vmem:[%s2319_s17] sm:$0xff] }
 0x3ae   : > { %v1333_v9 = vmul.f32 %v1329_v63, %v1325_v2  ;;  %v1326_v29 = vld [vmem:[%s2319_s17 + $0x8] sm:$0xff] }
 0x3af   : > { %v1056_v41 = vpop.f32.mrf.mxu0  ;;  %v1334_v15 = vmul.f32 %v1330_v23, %v1326_v29 }
 0x3b0   : > { %v1094_v42 = vadd.f32 %v1056_v41, %v932_v39  ;;  %1337 = vst.msk [vmem:[%s2319_s17] sm:$0xff] %vm535_vm0, %v1333_v9  ;;  %v1195_v18 = vpop.f32.mrf.mxu2  ;;  %v939_v41 = vld [vmem:[%s2179_s24 + $0x60] sm:$0xff] }
 0x3b1   : > { %v1265_v43 = vld [vmem:[%s2179_s24 + $0x20] sm:$0xff]  ;;  %1338 = vst.msk [vmem:[%s2319_s17 + $0x8] sm:$0xff] %vm535_vm0, %v1334_v15  ;;  %v1201_v37 = vadd.f32 %v1195_v18, %v1124_v36 }
 0x3b2   : > { %v1297_v44 = vmul.f32 %v1281_v40, %v1265_v43  ;;  %1110 = vst.msk [vmem:[%s2179_s24 + $0x28] sm:$0xff] %vm535_vm0, %v1094_v42  ;;  %v1327_v4 = vld [vmem:[%s2319_s17 + $0x10] sm:$0xff]  ;;  %v1332_v42 = vld [vmem:[%s2622_s9 + $0x18] sm:$0xff] }
 0x3b3   : > { %v1335_v21 = vmul.f32 %v1331_v35, %v1327_v4  ;;  %1205 = vst.msk [vmem:[%s2319_s17 + $0x18] sm:$0xff] %vm535_vm0, %v1201_v37 }
 0x3b4   : > { %1313 = vst.msk [vmem:[%s2179_s24 + $0x20] sm:$0xff] %vm535_vm0, %v1297_v44 }
 0x3b5   : > { %1339 = vst.msk [vmem:[%s2319_s17 + $0x10] sm:$0xff] %vm535_vm0, %v1335_v21 }
 0x3b7   : > { %v1059_v47 = vpop.f32.mrf.mxu0 }
 0x3b8   : > { %v1095_v5 = vadd.f32 %v1059_v47, %v933_v45 }
 0x3b9   : > { %v1266_v48 = vld [vmem:[%s2179_s24 + $0x28] sm:$0xff] }
 0x3ba   : > { %v1298_v49 = vmul.f32 %v1282_v46, %v1266_v48  ;;  %1111 = vst.msk [vmem:[%s2179_s24 + $0x30] sm:$0xff] %vm535_vm0, %v1095_v5  ;;  %v1328_v45 = vld [vmem:[%s2319_s17 + $0x18] sm:$0xff] }
 0x3bb   : > { %v1336_v46 = vmul.f32 %v1332_v42, %v1328_v45 }
 0x3bc   : > { %1314 = vst.msk [vmem:[%s2179_s24 + $0x28] sm:$0xff] %vm535_vm0, %v1298_v49 }
 0x3bd   : > { %1340 = vst.msk [vmem:[%s2319_s17 + $0x18] sm:$0xff] %vm535_vm0, %v1336_v46 }
 0x3bf   : > { %v1062_v51 = vpop.f32.mrf.mxu0 }
 0x3c0   : > { %v1096_v52 = vadd.f32 %v1062_v51, %v934_v24 }
 0x3c1   : > { %v1267_v53 = vld [vmem:[%s2179_s24 + $0x30] sm:$0xff] }
 0x3c2   : > { %v1299_v54 = vmul.f32 %v1283_v50, %v1267_v53  ;;  %1112 = vst.msk [vmem:[%s2179_s24 + $0x38] sm:$0xff] %vm535_vm0, %v1096_v52 }
 0x3c4   : > { %1315 = vst.msk [vmem:[%s2179_s24 + $0x30] sm:$0xff] %vm535_vm0, %v1299_v54 }
 0x3c7   : > { %v1065_v7 = vpop.f32.mrf.mxu0 }
 0x3c8   : > { %v1097_v59 = vadd.f32 %v1065_v7, %v935_v55 }
 0x3c9   : > { %v1268_v60 = vld [vmem:[%s2179_s24 + $0x38] sm:$0xff] }
 0x3ca   : > { %v1300_v61 = vmul.f32 %v1284_v57, %v1268_v60  ;;  %1113 = vst.msk [vmem:[%s2179_s24 + $0x40] sm:$0xff] %vm535_vm0, %v1097_v59 }
 0x3cc   : > { %1316 = vst.msk [vmem:[%s2179_s24 + $0x38] sm:$0xff] %vm535_vm0, %v1300_v61 }
 0x3cf   : > { %v1068_v8 = vpop.f32.mrf.mxu0 }
 0x3d0   : > { %v1098_v1 = vadd.f32 %v1068_v8, %v936_v62 }
 0x3d1   : > { %v1269_v3 = vld [vmem:[%s2179_s24 + $0x40] sm:$0xff] }
 0x3d2   : > { %v1301_v10 = vmul.f32 %v1285_v0, %v1269_v3  ;;  %1114 = vst.msk [vmem:[%s2179_s24 + $0x48] sm:$0xff] %vm535_vm0, %v1098_v1 }
 0x3d4   : > { %1317 = vst.msk [vmem:[%s2179_s24 + $0x40] sm:$0xff] %vm535_vm0, %v1301_v10 }
 0x3d7   : > { %v1071_v17 = vpop.f32.mrf.mxu0 }
 0x3d8   : > { %v1099_v19 = vadd.f32 %v1071_v17, %v937_v14 }
 0x3d9   : > { %v1270_v20 = vld [vmem:[%s2179_s24 + $0x48] sm:$0xff] }
 0x3da   : > { %v1302_v22 = vmul.f32 %v1286_v31, %v1270_v20  ;;  %1115 = vst.msk [vmem:[%s2179_s24 + $0x50] sm:$0xff] %vm535_vm0, %v1099_v19 }
 0x3dc   : > { %1318 = vst.msk [vmem:[%s2179_s24 + $0x48] sm:$0xff] %vm535_vm0, %v1302_v22  ;;  %v1077_v43 = vpop.f32.mrf.mxu3 }
 0x3dd   : > { %v1101_v44 = vadd.f32 %v1077_v43, %v939_v41 }
 0x3df   : > { %v1074_v12 = vpop.f32.mrf.mxu0  ;;  %1117 = vst.msk [vmem:[%s2179_s24 + $0x60] sm:$0xff] %vm535_vm0, %v1101_v44 }
 0x3e0   : > { %v1100_v32 = vadd.f32 %v1074_v12, %v938_v27 }
 0x3e1   : > { %v1271_v33 = vld [vmem:[%s2179_s24 + $0x50] sm:$0xff] }
 0x3e2   : > { %v1303_v34 = vmul.f32 %v1287_v30, %v1271_v33  ;;  %1116 = vst.msk [vmem:[%s2179_s24 + $0x58] sm:$0xff] %vm535_vm0, %v1100_v32 }
 0x3e4   : > { %1319 = vst.msk [vmem:[%s2179_s24 + $0x50] sm:$0xff] %vm535_vm0, %v1303_v34 }
 0x3e9   : > { %v1272_v39 = vld [vmem:[%s2179_s24 + $0x58] sm:$0xff] }
 0x3ea   : > { %v1304_v40 = vmul.f32 %v1288_v38, %v1272_v39 }
 0x3ec   : > { %1320 = vst.msk [vmem:[%s2179_s24 + $0x58] sm:$0xff] %vm535_vm0, %v1304_v40 }
 0x3ed   : > { %1872 = shalt.err (!%p1869_p1)
}
 0x3ee   : > { %s1934_s1 = smov 128   ;;  %s1935_s17 = smov 8   ;;  %v940_v47 = vld [vmem:[%s2179_s24 + $0x68] sm:$0xff]  ;;  %v1289_v5 = vld [vmem:[%s2621_s8 + $0x60] sm:$0xff]  ;;  %v1080_v48 = vpop.f32.mrf.mxu3  ;;  %v941_v51 = vld [vmem:[%s2179_s24 + $0x70] sm:$0xff] }
 0x3ef   : > { %1676 = dma.vmem_to_hbm [thread:$0]  (%p2053_p4), %s1375_s16, 512, %s1377_s22, %s1347_s5, %s1934_s1, %s1934_s1, %s1935_s17   ;;  %v1102_v49 = vadd.f32 %v1080_v48, %v940_v47 }
 0x3f0   : > { %v1273_v24 = vld [vmem:[%s2179_s24 + $0x60] sm:$0xff]  ;;  %v1290_v52 = vld [vmem:[%s2621_s8 + $0x68] sm:$0xff]  ;;  %v942_v56 = vld [vmem:[%s2179_s24 + $0x78] sm:$0xff] }
 0x3f1   : > { %v1305_v50 = vmul.f32 %v1289_v5, %v1273_v24  ;;  %1118 = vst.msk [vmem:[%s2179_s24 + $0x68] sm:$0xff] %vm535_vm0, %v1102_v49  ;;  %v1291_v57 = vld [vmem:[%s2621_s8 + $0x70] sm:$0xff]  ;;  %v1292_v61 = vld [vmem:[%s2621_s8 + $0x78] sm:$0xff] }
 0x3f3   : > { %1321 = vst.msk [vmem:[%s2179_s24 + $0x60] sm:$0xff] %vm535_vm0, %v1305_v50 }
 0x3f6   : > { %v1083_v53 = vpop.f32.mrf.mxu3 }
 0x3f7   : > { %v1103_v54 = vadd.f32 %v1083_v53, %v941_v51 }
 0x3f8   : > { %v1274_v55 = vld [vmem:[%s2179_s24 + $0x68] sm:$0xff] }
 0x3f9   : > { %v1306_v6 = vmul.f32 %v1290_v52, %v1274_v55  ;;  %1119 = vst.msk [vmem:[%s2179_s24 + $0x70] sm:$0xff] %vm535_vm0, %v1103_v54 }
 0x3fb   : > { %1322 = vst.msk [vmem:[%s2179_s24 + $0x68] sm:$0xff] %vm535_vm0, %v1306_v6 }
 0x3fe   : > { %v1086_v7 = vpop.f32.mrf.mxu3 }
 0x3ff   : > { %v1104_v58 = vadd.f32 %v1086_v7, %v942_v56 }
 0x400   : > { %v1275_v59 = vld [vmem:[%s2179_s24 + $0x70] sm:$0xff] }
 0x401   : > { %v1307_v60 = vmul.f32 %v1291_v57, %v1275_v59  ;;  %1120 = vst.msk [vmem:[%s2179_s24 + $0x78] sm:$0xff] %vm535_vm0, %v1104_v58 }
 0x403   : > { %1323 = vst.msk [vmem:[%s2179_s24 + $0x70] sm:$0xff] %vm535_vm0, %v1307_v60 }
 0x408   : > { %v1276_v62 = vld [vmem:[%s2179_s24 + $0x78] sm:$0xff] }
 0x409   : > { %v1308_v63 = vmul.f32 %v1292_v61, %v1276_v62 }
 0x40b   : > { %1324 = vst.msk [vmem:[%s2179_s24 + $0x78] sm:$0xff] %vm535_vm0, %v1308_v63 }
 0x40c PF: > { %p1697_p4 = scmp.ge.s32.totalorder %s1931_s18, 2  ;;  %s1438_s5 = sand.u32 1, %s1911_s29  }
 0x40d   : > { %s1439_s6 = scalar_lea.sflag [#allocation3], %s1438_s5 }
 0x40e   : > { %p1685_p2 = pnand %p1697_p4, %p2062_p8 }
 0x410   : > { %p1686_p3 = pneg %p1685_p2 }
 0x412   : > { %1898 = dma.done.wait (%p1686_p3), %s1439_s6, 512  }
 0x413   : > { %1900 = vsyncadd (%p1686_p3), %s1439_s6, 4294966784  ;;  %s2654_s3 = sadd.s32 4294967294, %s1931_s18  }
 0x414   : > { %s1448_s7 = sand.u32 1, %s2654_s3  }
 0x415   : > { %s1449_s21 = scalar_lea.sflag [#allocation5], %s1448_s7 }
 0x416   : > { %1902 = dma.done.wait (%p1686_p3), %s1449_s21, 32  }
 0x417   : > { %1904 = vsyncadd (%p1686_p3), %s1449_s21, 4294967264  ;;  %s1467_s2 = scalar_lea.sflag [#allocation8], %s1438_s5 }
 0x418   : > { %1906 = dma.done.wait (%p1686_p3), %s1467_s2, 16  }
 0x419   : > { %1908 = vsyncadd (%p1686_p3), %s1467_s2, 4294967280  ;;  %s34_s18 = sadd.s32 1, %s1931_s18   ;;  %s2655_s25 = sld [smem:[#allocation14_spill]] }
 0x41a   : > { %p31_p5 = scmp.ge.s32.totalorder %s34_s18, 4   ;;  %s2656_s16 = sld [smem:[#allocation12_spill]] }
 0x41b   : > { %s2657_s17 = sld [smem:[#allocation13_spill]]  ;;  %s2658_s29 = smov %s1915_s30 }
 0x41c   : > { %s2659_s30 = smov %s1919_s15  ;;  %33 = sbr.rel (!%p31_p5) target bundleno = 17 (0x11), region = 164 }
 0x41f   : > { %s2660_s15 = smov %s2655_s25 }
 0x421   :  { %1472 = vsyncpa [#allocation3], 1 }
 0x422   :  { %1474 = vsyncpa [#allocation3 + $0x1], 1 }
 0x423   :  { %1475 = vsyncpa [#allocation5], 1 }
 0x424   :  { %1477 = vsyncpa [#allocation5 + $0x1], 1 }
 0x425   :  { %1478 = vsyncpa [#allocation8], 1 }
 0x426   :  { %1480 = vsyncpa [#allocation8 + $0x1], 1 }

</bundles_post_ra>
